<compile_context>
chip_gen: v5e
topology: v5e:2x2
jax: 0.10.0
libtpu: 0.0.40
codegen_flags: <defaults>
</compile_context>

<pallas_src>
import math
from functools import partial

import jax
import jax.numpy as jnp
from jax.experimental import pallas as pl
from jax.experimental.pallas import tpu as pltpu


# ----------------------------- in-kernel helpers -----------------------------

def _dot_bf16(a, w_ref):
    """bf16 MXU matmul with f32 accumulation; weights are stored bf16, (in, out) layout."""
    return jnp.dot(a.astype(jnp.bfloat16), w_ref[...], preferred_element_type=jnp.float32)


def _layernorm(x, g, b, eps):
    mu = jnp.mean(x, axis=-1, keepdims=True)
    xc = x - mu
    var = jnp.mean(xc * xc, axis=-1, keepdims=True)
    return xc * jax.lax.rsqrt(var + eps) * g + b


# ----------------------------- Pallas kernels -----------------------------

def _embed_kernel(x_ref, w0_ref, w1_ref, w2_ref, pe_ref, o_ref):
    """Fused TokenEmbedding Conv1d(k=3, circular pad, bias=False) + positional embedding."""
    x = x_ref[0]                                      # (W, F) f32
    xm = jnp.concatenate([x[-1:], x[:-1]], axis=0)    # x[w-1] (circular)
    xp = jnp.concatenate([x[1:], x[:1]], axis=0)      # x[w+1] (circular)
    acc = _dot_bf16(xm, w0_ref) + _dot_bf16(x, w1_ref) + _dot_bf16(xp, w2_ref)
    out = acc + pe_ref[...]
    o_ref[...] = out.reshape(1, *out.shape)


def _encoder_layer_kernel(x_ref, wqkv_ref, bqkv_ref, wo_ref, bo_ref,
                          g1_ref, be1_ref, w1_ref, bf1_ref, w2_ref, bf2_ref,
                          g2_ref, be2_ref, o_ref, *, n_heads, eps):
    """Full post-norm TransformerEncoderLayer (eval) fused into one kernel.
    x block: (w_tile, L, E) with L = batch axis (batch_first=False semantics)."""
    wt, L, E = x_ref.shape
    hd = E // n_heads
    x = x_ref[...].reshape(wt * L, E)

    # QKV projection (scale 1/sqrt(hd) pre-folded into the Q columns + bias).
    qkv = _dot_bf16(x, wqkv_ref) + bqkv_ref[...]              # (wt*L, 3E) f32
    qkv = qkv.reshape(wt, L, 3 * E)

    head_outs = []
    for h in range(n_heads):                                  # static unroll
        q = qkv[:, :, h * hd:(h + 1) * hd].astype(jnp.bfloat16)             # (wt, L, hd)
        k = qkv[:, :, E + h * hd:E + (h + 1) * hd].astype(jnp.bfloat16)
        v = qkv[:, :, 2 * E + h * hd:2 * E + (h + 1) * hd].astype(jnp.bfloat16)
        s = jnp.einsum('nld,nmd->nlm', q, k, preferred_element_type=jnp.float32)
        s = s - jnp.max(s, axis=-1, keepdims=True)
        p = jnp.exp(s)
        p = p * pl.reciprocal(jnp.sum(p, axis=-1, keepdims=True), approx=True)
        o = jnp.einsum('nlm,nmd->nld', p.astype(jnp.bfloat16), v,
                       preferred_element_type=jnp.float32)                  # (wt, L, hd)
        head_outs.append(o)
    attn = jnp.concatenate(head_outs, axis=-1).reshape(wt * L, E)

    # out-proj + residual + LN1
    y = x + _dot_bf16(attn, wo_ref) + bo_ref[...]
    y = _layernorm(y, g1_ref[...], be1_ref[...], eps)

    # FFN (ReLU) + residual + LN2 — bias/ReLU fused into the matmul epilogues.
    hdn = jnp.maximum(_dot_bf16(y, w1_ref) + bf1_ref[...], 0.0)
    y2 = y + _dot_bf16(hdn, w2_ref) + bf2_ref[...]
    y2 = _layernorm(y2, g2_ref[...], be2_ref[...], eps)

    o_ref[...] = y2.reshape(wt, L, E)


def _cnn_block_kernel(x_ref, w0_ref, w1_ref, w2_ref, b_ref, scale_ref, shift_ref,
                      se_ref, so_ref, o_ref):
    """Fused Conv1d(k=3, pad=1) over W + BatchNorm1d(win) eval affine + ReLU +
    MaxPool1d(2,2) over channels (via exact 0/1 column-selection matmuls)."""
    x = x_ref[0]                                      # (W, Cin) f32
    zero = jnp.zeros_like(x[:1])
    xm = jnp.concatenate([zero, x[:-1]], axis=0)      # x[w-1] (zero pad)
    xp = jnp.concatenate([x[1:], zero], axis=0)       # x[w+1] (zero pad)
    acc = _dot_bf16(xm, w0_ref) + _dot_bf16(x, w1_ref) + _dot_bf16(xp, w2_ref)
    acc = acc + b_ref[...]                            # conv bias (1, Cout)
    y = jnp.maximum(acc * scale_ref[...] + shift_ref[...], 0.0)   # BN + ReLU, (W, Cout)
    y_even = jnp.dot(y, se_ref[...], preferred_element_type=jnp.float32)   # cols 0,2,4,...
    y_odd = jnp.dot(y, so_ref[...], preferred_element_type=jnp.float32)    # cols 1,3,5,...
    out = jnp.maximum(y_even, y_odd)                  # (W, Cout // 2)
    o_ref[...] = out.reshape(1, *out.shape)


def _head_kernel(x_ref, w_ref, b_ref, o_ref):
    """MLP head: Dropout(identity in eval) -> Linear, bias fused into the matmul epilogue."""
    o_ref[...] = _dot_bf16(x_ref[...], w_ref) + b_ref[...]


# ----------------------------- pallas_call wrappers -----------------------------

def _full_spec(arr):
    nd = arr.ndim
    return pl.BlockSpec(arr.shape, lambda *_: (0,) * nd)


def embed(x, tok_ws, pe):
    B, W, F = x.shape
    D = tok_ws[0].shape[1]
    w0, w1, w2 = tok_ws
    return pl.pallas_call(
        _embed_kernel,
        out_shape=jax.ShapeDtypeStruct((B, W, D), jnp.float32),
        grid=(B,),
        in_specs=[pl.BlockSpec((1, W, F), lambda b: (b, 0, 0)),
                  _full_spec(w0), _full_spec(w1), _full_spec(w2), _full_spec(pe)],
        out_specs=pl.BlockSpec((1, W, D), lambda b: (b, 0, 0)),
        compiler_params=pltpu.CompilerParams(dimension_semantics=("parallel",)),
    )(x, w0, w1, w2, pe)


def encoder_layer(h, lp, n_heads, eps=1e-5):
    """h: (W, B, E) — one fused kernel per layer, gridded over independent win tiles."""
    W, L, E = h.shape
    w_tile = W // 2 if (W % 2 == 0 and W >= 4) else W   # shard win tiles across TCs (v7x)
    args = (lp["wqkv"], lp["bqkv"], lp["wo"], lp["bo"], lp["g1"], lp["be1"],
            lp["w1"], lp["bf1"], lp["w2"], lp["bf2"], lp["g2"], lp["be2"])
    x_spec = pl.BlockSpec((w_tile, L, E), lambda i: (i, 0, 0))
    return pl.pallas_call(
        partial(_encoder_layer_kernel, n_heads=n_heads, eps=eps),
        out_shape=jax.ShapeDtypeStruct((W, L, E), jnp.float32),
        grid=(W // w_tile,),
        in_specs=[x_spec] + [_full_spec(a) for a in args],
        out_specs=x_spec,
        compiler_params=pltpu.CompilerParams(dimension_semantics=("parallel",)),
    )(h, *args)


def cnn_block(x, conv_ws, conv_b, bn_scale, bn_shift, se, so):
    B, W, Cin = x.shape
    Cout = conv_ws[0].shape[1]
    w0, w1, w2 = conv_ws
    return pl.pallas_call(
        _cnn_block_kernel,
        out_shape=jax.ShapeDtypeStruct((B, W, Cout // 2), jnp.float32),
        grid=(B,),
        in_specs=[pl.BlockSpec((1, W, Cin), lambda b: (b, 0, 0)),
                  _full_spec(w0), _full_spec(w1), _full_spec(w2),
                  _full_spec(conv_b), _full_spec(bn_scale), _full_spec(bn_shift),
                  _full_spec(se), _full_spec(so)],
        out_specs=pl.BlockSpec((1, W, Cout // 2), lambda b: (b, 0, 0)),
        compiler_params=pltpu.CompilerParams(dimension_semantics=("parallel",)),
    )(x, w0, w1, w2, conv_b, bn_scale, bn_shift, se, so)


def head(flat, w, b):
    B, Fin = flat.shape
    NC = w.shape[1]
    return pl.pallas_call(
        _head_kernel,
        out_shape=jax.ShapeDtypeStruct((B, NC), jnp.float32),
        grid=(1,),
        in_specs=[_full_spec(flat), _full_spec(w), _full_spec(b)],
        out_specs=pl.BlockSpec((B, NC), lambda i: (0, 0)),
    )(flat, w, b)


# ----------------------------- forward -----------------------------

def transformer_forward(prep, x, *, n_heads):
    """x: (B, W, feature_num) -> logits (B, num_classes)."""
    B, W, F = x.shape
    h = embed(x, prep["tok_w"], prep["pe"])              # (B, W, D)
    # batch_first=False: dim0 is "seq" (=B), dim1 is "batch" (=W). Carry the encoder
    # activation as (W, B, D) so attention batch/seq dims are block-leading in-kernel.
    h = jnp.transpose(h, (1, 0, 2))                      # (W, B, D)  (one tiny relayout)
    for lp in prep["layers"]:
        h = encoder_layer(h, lp, n_heads)
    out = jnp.transpose(h, (1, 0, 2))                    # (B, W, D)
    out = cnn_block(out, prep["cnn1_w"], prep["cnn1_b"],
                    prep["bn_scale"], prep["bn_shift"], prep["se1"], prep["so1"])  # (B,W,D/2)
    out = cnn_block(out, prep["cnn2_w"], prep["cnn2_b"],
                    prep["bn_scale"], prep["bn_shift"], prep["se2"], prep["so2"])  # (B,W,D/4)
    flat = out.reshape(B, -1)                            # (B, W*D/4)
    return head(flat, prep["head_w"], prep["head_b"])


# ----------------------------- parameters -----------------------------

def positional_embedding(win, d_model):
    pos = jnp.arange(win, dtype=jnp.float32)[:, None]
    div = jnp.exp(jnp.arange(0, d_model, 2, dtype=jnp.float32) * (-math.log(10000.0) / d_model))
    pe = jnp.zeros((win, d_model), jnp.float32)
    pe = pe.at[:, 0::2].set(jnp.sin(pos * div))
    pe = pe.at[:, 1::2].set(jnp.cos(pos * div))
    return pe


def init_params(key, feature_num, d_model, n_heads, e_layers, d_ff, win_size, num_classes):
    """Parameters in PyTorch layout (as the nn.Module would hold them)."""
    keys = iter(jax.random.split(key, 8 * e_layers + 16))

    def nrm(shape, s=0.05):
        return jax.random.normal(next(keys), shape, jnp.float32) * s

    params = {"tok_w": nrm((d_model, feature_num, 3))}   # TokenEmbedding conv, bias=False
    layers = []
    for _ in range(e_layers):
        layers.append(dict(
            in_proj_w=nrm((3 * d_model, d_model)), in_proj_b=nrm((3 * d_model,)),
            out_proj_w=nrm((d_model, d_model)), out_proj_b=nrm((d_model,)),
            ln1_g=jnp.ones((d_model,), jnp.float32), ln1_b=jnp.zeros((d_model,), jnp.float32),
            ln2_g=jnp.ones((d_model,), jnp.float32), ln2_b=jnp.zeros((d_model,), jnp.float32),
            ff1_w=nrm((d_ff, d_model)), ff1_b=nrm((d_ff,)),
            ff2_w=nrm((d_model, d_ff)), ff2_b=nrm((d_model,)),
        ))
    params["layers"] = layers
    params["cnn1_w"] = nrm((d_model, d_model, 3))
    params["cnn1_b"] = nrm((d_model,))
    params["cnn2_w"] = nrm((d_model // 2, d_model // 2, 3))
    params["cnn2_b"] = nrm((d_model // 2,))
    # BatchNorm1d(win_size) eval-mode state (PyTorch defaults); same module used twice.
    params["bn_gamma"] = jnp.ones((win_size,), jnp.float32)
    params["bn_beta"] = jnp.zeros((win_size,), jnp.float32)
    params["bn_mean"] = jnp.zeros((win_size,), jnp.float32)
    params["bn_var"] = jnp.ones((win_size,), jnp.float32)
    params["head_w"] = nrm((num_classes, d_model // 4 * win_size))
    params["head_b"] = nrm((num_classes,))
    return params


def prepare_params(p, d_model, n_heads, win_size, eps=1e-5):
    """One-time conversion to kernel layout: (in, out)-transposed bf16 matmul weights,
    attention scale folded into Q, BN folded to per-win scale/shift, f32 biases/LN params,
    and the 0/1 column-selection matrices used for the fused channel maxpool."""
    E = d_model
    scale = 1.0 / math.sqrt(E // n_heads)

    def conv_taps(w):   # (Cout, Cin, 3) -> 3 x (Cin, Cout) bf16
        return tuple(w[:, :, k].T.astype(jnp.bfloat16) for k in range(3))

    def sel(c):
        eye = jnp.eye(c, dtype=jnp.float32)
        return eye[:, 0::2], eye[:, 1::2]

    prep = {
        "tok_w": conv_taps(p["tok_w"]),
        "pe": positional_embedding(win_size, E),
        "cnn1_w": conv_taps(p["cnn1_w"]), "cnn1_b": p["cnn1_b"].reshape(1, -1),
        "cnn2_w": conv_taps(p["cnn2_w"]), "cnn2_b": p["cnn2_b"].reshape(1, -1),
        "head_w": p["head_w"].T.astype(jnp.bfloat16),
        "head_b": p["head_b"].reshape(1, -1),
    }
    bn_scale = p["bn_gamma"] / jnp.sqrt(p["bn_var"] + eps)
    prep["bn_scale"] = bn_scale.reshape(win_size, 1)
    prep["bn_shift"] = (p["bn_beta"] - p["bn_mean"] * bn_scale).reshape(win_size, 1)
    prep["se1"], prep["so1"] = sel(E)
    prep["se2"], prep["so2"] = sel(E // 2)

    layers = []
    for lp in p["layers"]:
        wqkv = lp["in_proj_w"].T                       # (E, 3E)
        wqkv = wqkv.at[:, :E].multiply(scale)          # fold 1/sqrt(hd) into Q
        bqkv = lp["in_proj_b"].at[:E].multiply(scale)
        layers.append(dict(
            wqkv=wqkv.astype(jnp.bfloat16), bqkv=bqkv.reshape(1, -1),
            wo=lp["out_proj_w"].T.astype(jnp.bfloat16), bo=lp["out_proj_b"].reshape(1, -1),
            g1=lp["ln1_g"].reshape(1, -1), be1=lp["ln1_b"].reshape(1, -1),
            w1=lp["ff1_w"].T.astype(jnp.bfloat16), bf1=lp["ff1_b"].reshape(1, -1),
            w2=lp["ff2_w"].T.astype(jnp.bfloat16), bf2=lp["ff2_b"].reshape(1, -1),
            g2=lp["ln2_g"].reshape(1, -1), be2=lp["ln2_b"].reshape(1, -1),
        ))
    prep["layers"] = layers
    return prep


# ----------------------------- main -----------------------------

if __name__ == "__main__":
    # small shapes consistent with the module's forward
    B, WIN, FEAT = 2, 8, 4
    D_MODEL, N_HEADS, E_LAYERS, D_FF, NUM_CLASSES = 32, 4, 2, 64, 3

    key = jax.random.PRNGKey(0)
    kx, kp = jax.random.split(key)
    x = jax.random.normal(kx, (B, WIN, FEAT), jnp.float32)
    params = init_params(kp, FEAT, D_MODEL, N_HEADS, E_LAYERS, D_FF, WIN, NUM_CLASSES)
    prep = prepare_params(params, D_MODEL, N_HEADS, WIN)

    fwd = jax.jit(partial(transformer_forward, n_heads=N_HEADS))
    out = jax.block_until_ready(fwd(prep, x))
    assert out.shape == (B, NUM_CLASSES)
    assert bool(jnp.all(jnp.isfinite(out)))
    print("KERNEL_OK")
</pallas_src>

<mosaic_0001>
module attributes {stable_mosaic.version = 11 : i64} {
  func.func @_encoder_layer_kernel(%arg0: i32, %arg1: memref<4x2x32xf32, #tpu.memory_space<vmem>>, %arg2: memref<32x96xbf16, #tpu.memory_space<vmem>>, %arg3: memref<1x96xf32, #tpu.memory_space<vmem>>, %arg4: memref<32x32xbf16, #tpu.memory_space<vmem>>, %arg5: memref<1x32xf32, #tpu.memory_space<vmem>>, %arg6: memref<1x32xf32, #tpu.memory_space<vmem>>, %arg7: memref<1x32xf32, #tpu.memory_space<vmem>>, %arg8: memref<32x64xbf16, #tpu.memory_space<vmem>>, %arg9: memref<1x64xf32, #tpu.memory_space<vmem>>, %arg10: memref<64x32xbf16, #tpu.memory_space<vmem>>, %arg11: memref<1x32xf32, #tpu.memory_space<vmem>>, %arg12: memref<1x32xf32, #tpu.memory_space<vmem>>, %arg13: memref<1x32xf32, #tpu.memory_space<vmem>>, %arg14: memref<4x2x32xf32, #tpu.memory_space<vmem>>) attributes {dimension_semantics = [#tpu.dimension_semantics<parallel>], iteration_bounds = array<i64: 2>, scalar_prefetch = 0 : i64, scratch_operands = 0 : i64, tpu.core_type = #tpu.core_type<tc>, window_params = [{transform_indices = @transform_0, window_bounds = array<i64: 4, 2, 32>}, {pipeline_mode = #tpu.pipeline_mode<synchronous>, transform_indices = @transform_1, window_bounds = array<i64: 32, 96>}, {pipeline_mode = #tpu.pipeline_mode<synchronous>, transform_indices = @transform_2, window_bounds = array<i64: 1, 96>}, {pipeline_mode = #tpu.pipeline_mode<synchronous>, transform_indices = @transform_3, window_bounds = array<i64: 32, 32>}, {pipeline_mode = #tpu.pipeline_mode<synchronous>, transform_indices = @transform_4, window_bounds = array<i64: 1, 32>}, {pipeline_mode = #tpu.pipeline_mode<synchronous>, transform_indices = @transform_5, window_bounds = array<i64: 1, 32>}, {pipeline_mode = #tpu.pipeline_mode<synchronous>, transform_indices = @transform_6, window_bounds = array<i64: 1, 32>}, {pipeline_mode = #tpu.pipeline_mode<synchronous>, transform_indices = @transform_7, window_bounds = array<i64: 32, 64>}, {pipeline_mode = #tpu.pipeline_mode<synchronous>, transform_indices = @transform_8, window_bounds = array<i64: 1, 64>}, {pipeline_mode = #tpu.pipeline_mode<synchronous>, transform_indices = @transform_9, window_bounds = array<i64: 64, 32>}, {pipeline_mode = #tpu.pipeline_mode<synchronous>, transform_indices = @transform_10, window_bounds = array<i64: 1, 32>}, {pipeline_mode = #tpu.pipeline_mode<synchronous>, transform_indices = @transform_11, window_bounds = array<i64: 1, 32>}, {pipeline_mode = #tpu.pipeline_mode<synchronous>, transform_indices = @transform_12, window_bounds = array<i64: 1, 32>}, {transform_indices = @transform_13, window_bounds = array<i64: 4, 2, 32>}]} {
    %c0 = arith.constant 0 : index
    %c0_0 = arith.constant 0 : index
    %c0_1 = arith.constant 0 : index
    %0 = vector.load %arg1[%c0, %c0_0, %c0_1] : memref<4x2x32xf32, #tpu.memory_space<vmem>>, vector<4x2x32xf32>
    %1 = vector.shape_cast %0 : vector<4x2x32xf32> to vector<8x32xf32>
    %2 = arith.truncf %1 : vector<8x32xf32> to vector<8x32xbf16>
    %c0_2 = arith.constant 0 : index
    %c0_3 = arith.constant 0 : index
    %3 = vector.load %arg2[%c0_2, %c0_3] : memref<32x96xbf16, #tpu.memory_space<vmem>>, vector<32x96xbf16>
    %cst = arith.constant dense<0.000000e+00> : vector<8x96xf32>
    %4 = tpu.matmul %2, %3, %cst {dimension_numbers = #tpu.dot_dimension_numbers<[1], [0], [0], [1], [0, 0, 1, 1], [], []>} : vector<8x32xbf16>, vector<32x96xbf16>, vector<8x96xf32> -> vector<8x96xf32>
    %c0_4 = arith.constant 0 : index
    %c0_5 = arith.constant 0 : index
    %5 = vector.load %arg3[%c0_4, %c0_5] : memref<1x96xf32, #tpu.memory_space<vmem>>, vector<1x96xf32>
    %6 = vector.broadcast %5 : vector<1x96xf32> to vector<8x96xf32>
    %7 = arith.addf %4, %6 : vector<8x96xf32>
    %8 = vector.shape_cast %7 : vector<8x96xf32> to vector<4x2x96xf32>
    %9 = vector.extract_strided_slice %8 {offsets = [0, 0, 0], sizes = [4, 2, 8], strides = [1, 1, 1]} : vector<4x2x96xf32> to vector<4x2x8xf32>
    %10 = arith.truncf %9 : vector<4x2x8xf32> to vector<4x2x8xbf16>
    %11 = vector.extract_strided_slice %8 {offsets = [0, 0, 32], sizes = [4, 2, 8], strides = [1, 1, 1]} : vector<4x2x96xf32> to vector<4x2x8xf32>
    %12 = arith.truncf %11 : vector<4x2x8xf32> to vector<4x2x8xbf16>
    %13 = vector.extract_strided_slice %8 {offsets = [0, 0, 64], sizes = [4, 2, 8], strides = [1, 1, 1]} : vector<4x2x96xf32> to vector<4x2x8xf32>
    %14 = arith.truncf %13 : vector<4x2x8xf32> to vector<4x2x8xbf16>
    "tpu.trace_start"() <{level = 10 : i32, message = "nld,nmd->nlm"}> : () -> ()
    %cst_6 = arith.constant dense<0.000000e+00> : vector<4x2x2xf32>
    %15 = tpu.matmul %10, %12, %cst_6 {dimension_numbers = #tpu.dot_dimension_numbers<[2], [2], [1], [1], [0, 0, 0, 1, 1, 1], [0], [0]>} : vector<4x2x8xbf16>, vector<4x2x8xbf16>, vector<4x2x2xf32> -> vector<4x2x2xf32>
    "tpu.trace_stop"() : () -> ()
    %cst_7 = arith.constant dense<0xFF800000> : vector<4x2xf32>
    %16 = vector.multi_reduction <maximumf>, %15, %cst_7 [2] : vector<4x2x2xf32> to vector<4x2xf32>
    %17 = vector.shape_cast %16 : vector<4x2xf32> to vector<4x2x1xf32>
    %18 = vector.broadcast %17 : vector<4x2x1xf32> to vector<4x2x2xf32>
    %19 = arith.subf %15, %18 : vector<4x2x2xf32>
    %20 = math.exp %19 : vector<4x2x2xf32>
    %cst_8 = arith.constant dense<0.000000e+00> : vector<4x2xf32>
    %21 = vector.multi_reduction <add>, %20, %cst_8 [2] : vector<4x2x2xf32> to vector<4x2xf32>
    %22 = vector.shape_cast %21 : vector<4x2xf32> to vector<4x2x1xf32>
    %23 = tpu.reciprocal %22 {approx = true} : vector<4x2x1xf32> -> vector<4x2x1xf32>
    %24 = vector.broadcast %23 : vector<4x2x1xf32> to vector<4x2x2xf32>
    %25 = arith.mulf %20, %24 : vector<4x2x2xf32>
    %26 = arith.truncf %25 : vector<4x2x2xf32> to vector<4x2x2xbf16>
    "tpu.trace_start"() <{level = 10 : i32, message = "nlm,nmd->nld"}> : () -> ()
    %cst_9 = arith.constant dense<0.000000e+00> : vector<4x2x8xf32>
    %27 = tpu.matmul %26, %14, %cst_9 {dimension_numbers = #tpu.dot_dimension_numbers<[2], [1], [1], [2], [0, 0, 0, 1, 1, 2], [0], [0]>} : vector<4x2x2xbf16>, vector<4x2x8xbf16>, vector<4x2x8xf32> -> vector<4x2x8xf32>
    "tpu.trace_stop"() : () -> ()
    %28 = vector.extract_strided_slice %8 {offsets = [0, 0, 8], sizes = [4, 2, 8], strides = [1, 1, 1]} : vector<4x2x96xf32> to vector<4x2x8xf32>
    %29 = arith.truncf %28 : vector<4x2x8xf32> to vector<4x2x8xbf16>
    %30 = vector.extract_strided_slice %8 {offsets = [0, 0, 40], sizes = [4, 2, 8], strides = [1, 1, 1]} : vector<4x2x96xf32> to vector<4x2x8xf32>
    %31 = arith.truncf %30 : vector<4x2x8xf32> to vector<4x2x8xbf16>
    %32 = vector.extract_strided_slice %8 {offsets = [0, 0, 72], sizes = [4, 2, 8], strides = [1, 1, 1]} : vector<4x2x96xf32> to vector<4x2x8xf32>
    %33 = arith.truncf %32 : vector<4x2x8xf32> to vector<4x2x8xbf16>
    "tpu.trace_start"() <{level = 10 : i32, message = "nld,nmd->nlm"}> : () -> ()
    %cst_10 = arith.constant dense<0.000000e+00> : vector<4x2x2xf32>
    %34 = tpu.matmul %29, %31, %cst_10 {dimension_numbers = #tpu.dot_dimension_numbers<[2], [2], [1], [1], [0, 0, 0, 1, 1, 1], [0], [0]>} : vector<4x2x8xbf16>, vector<4x2x8xbf16>, vector<4x2x2xf32> -> vector<4x2x2xf32>
    "tpu.trace_stop"() : () -> ()
    %cst_11 = arith.constant dense<0xFF800000> : vector<4x2xf32>
    %35 = vector.multi_reduction <maximumf>, %34, %cst_11 [2] : vector<4x2x2xf32> to vector<4x2xf32>
    %36 = vector.shape_cast %35 : vector<4x2xf32> to vector<4x2x1xf32>
    %37 = vector.broadcast %36 : vector<4x2x1xf32> to vector<4x2x2xf32>
    %38 = arith.subf %34, %37 : vector<4x2x2xf32>
    %39 = math.exp %38 : vector<4x2x2xf32>
    %cst_12 = arith.constant dense<0.000000e+00> : vector<4x2xf32>
    %40 = vector.multi_reduction <add>, %39, %cst_12 [2] : vector<4x2x2xf32> to vector<4x2xf32>
    %41 = vector.shape_cast %40 : vector<4x2xf32> to vector<4x2x1xf32>
    %42 = tpu.reciprocal %41 {approx = true} : vector<4x2x1xf32> -> vector<4x2x1xf32>
    %43 = vector.broadcast %42 : vector<4x2x1xf32> to vector<4x2x2xf32>
    %44 = arith.mulf %39, %43 : vector<4x2x2xf32>
    %45 = arith.truncf %44 : vector<4x2x2xf32> to vector<4x2x2xbf16>
    "tpu.trace_start"() <{level = 10 : i32, message = "nlm,nmd->nld"}> : () -> ()
    %cst_13 = arith.constant dense<0.000000e+00> : vector<4x2x8xf32>
    %46 = tpu.matmul %45, %33, %cst_13 {dimension_numbers = #tpu.dot_dimension_numbers<[2], [1], [1], [2], [0, 0, 0, 1, 1, 2], [0], [0]>} : vector<4x2x2xbf16>, vector<4x2x8xbf16>, vector<4x2x8xf32> -> vector<4x2x8xf32>
    "tpu.trace_stop"() : () -> ()
    %47 = vector.extract_strided_slice %8 {offsets = [0, 0, 16], sizes = [4, 2, 8], strides = [1, 1, 1]} : vector<4x2x96xf32> to vector<4x2x8xf32>
    %48 = arith.truncf %47 : vector<4x2x8xf32> to vector<4x2x8xbf16>
    %49 = vector.extract_strided_slice %8 {offsets = [0, 0, 48], sizes = [4, 2, 8], strides = [1, 1, 1]} : vector<4x2x96xf32> to vector<4x2x8xf32>
    %50 = arith.truncf %49 : vector<4x2x8xf32> to vector<4x2x8xbf16>
    %51 = vector.extract_strided_slice %8 {offsets = [0, 0, 80], sizes = [4, 2, 8], strides = [1, 1, 1]} : vector<4x2x96xf32> to vector<4x2x8xf32>
    %52 = arith.truncf %51 : vector<4x2x8xf32> to vector<4x2x8xbf16>
    "tpu.trace_start"() <{level = 10 : i32, message = "nld,nmd->nlm"}> : () -> ()
    %cst_14 = arith.constant dense<0.000000e+00> : vector<4x2x2xf32>
    %53 = tpu.matmul %48, %50, %cst_14 {dimension_numbers = #tpu.dot_dimension_numbers<[2], [2], [1], [1], [0, 0, 0, 1, 1, 1], [0], [0]>} : vector<4x2x8xbf16>, vector<4x2x8xbf16>, vector<4x2x2xf32> -> vector<4x2x2xf32>
    "tpu.trace_stop"() : () -> ()
    %cst_15 = arith.constant dense<0xFF800000> : vector<4x2xf32>
    %54 = vector.multi_reduction <maximumf>, %53, %cst_15 [2] : vector<4x2x2xf32> to vector<4x2xf32>
    %55 = vector.shape_cast %54 : vector<4x2xf32> to vector<4x2x1xf32>
    %56 = vector.broadcast %55 : vector<4x2x1xf32> to vector<4x2x2xf32>
    %57 = arith.subf %53, %56 : vector<4x2x2xf32>
    %58 = math.exp %57 : vector<4x2x2xf32>
    %cst_16 = arith.constant dense<0.000000e+00> : vector<4x2xf32>
    %59 = vector.multi_reduction <add>, %58, %cst_16 [2] : vector<4x2x2xf32> to vector<4x2xf32>
    %60 = vector.shape_cast %59 : vector<4x2xf32> to vector<4x2x1xf32>
    %61 = tpu.reciprocal %60 {approx = true} : vector<4x2x1xf32> -> vector<4x2x1xf32>
    %62 = vector.broadcast %61 : vector<4x2x1xf32> to vector<4x2x2xf32>
    %63 = arith.mulf %58, %62 : vector<4x2x2xf32>
    %64 = arith.truncf %63 : vector<4x2x2xf32> to vector<4x2x2xbf16>
    "tpu.trace_start"() <{level = 10 : i32, message = "nlm,nmd->nld"}> : () -> ()
    %cst_17 = arith.constant dense<0.000000e+00> : vector<4x2x8xf32>
    %65 = tpu.matmul %64, %52, %cst_17 {dimension_numbers = #tpu.dot_dimension_numbers<[2], [1], [1], [2], [0, 0, 0, 1, 1, 2], [0], [0]>} : vector<4x2x2xbf16>, vector<4x2x8xbf16>, vector<4x2x8xf32> -> vector<4x2x8xf32>
    "tpu.trace_stop"() : () -> ()
    %66 = vector.extract_strided_slice %8 {offsets = [0, 0, 24], sizes = [4, 2, 8], strides = [1, 1, 1]} : vector<4x2x96xf32> to vector<4x2x8xf32>
    %67 = arith.truncf %66 : vector<4x2x8xf32> to vector<4x2x8xbf16>
    %68 = vector.extract_strided_slice %8 {offsets = [0, 0, 56], sizes = [4, 2, 8], strides = [1, 1, 1]} : vector<4x2x96xf32> to vector<4x2x8xf32>
    %69 = arith.truncf %68 : vector<4x2x8xf32> to vector<4x2x8xbf16>
    %70 = vector.extract_strided_slice %8 {offsets = [0, 0, 88], sizes = [4, 2, 8], strides = [1, 1, 1]} : vector<4x2x96xf32> to vector<4x2x8xf32>
    %71 = arith.truncf %70 : vector<4x2x8xf32> to vector<4x2x8xbf16>
    "tpu.trace_start"() <{level = 10 : i32, message = "nld,nmd->nlm"}> : () -> ()
    %cst_18 = arith.constant dense<0.000000e+00> : vector<4x2x2xf32>
    %72 = tpu.matmul %67, %69, %cst_18 {dimension_numbers = #tpu.dot_dimension_numbers<[2], [2], [1], [1], [0, 0, 0, 1, 1, 1], [0], [0]>} : vector<4x2x8xbf16>, vector<4x2x8xbf16>, vector<4x2x2xf32> -> vector<4x2x2xf32>
    "tpu.trace_stop"() : () -> ()
    %cst_19 = arith.constant dense<0xFF800000> : vector<4x2xf32>
    %73 = vector.multi_reduction <maximumf>, %72, %cst_19 [2] : vector<4x2x2xf32> to vector<4x2xf32>
    %74 = vector.shape_cast %73 : vector<4x2xf32> to vector<4x2x1xf32>
    %75 = vector.broadcast %74 : vector<4x2x1xf32> to vector<4x2x2xf32>
    %76 = arith.subf %72, %75 : vector<4x2x2xf32>
    %77 = math.exp %76 : vector<4x2x2xf32>
    %cst_20 = arith.constant dense<0.000000e+00> : vector<4x2xf32>
    %78 = vector.multi_reduction <add>, %77, %cst_20 [2] : vector<4x2x2xf32> to vector<4x2xf32>
    %79 = vector.shape_cast %78 : vector<4x2xf32> to vector<4x2x1xf32>
    %80 = tpu.reciprocal %79 {approx = true} : vector<4x2x1xf32> -> vector<4x2x1xf32>
    %81 = vector.broadcast %80 : vector<4x2x1xf32> to vector<4x2x2xf32>
    %82 = arith.mulf %77, %81 : vector<4x2x2xf32>
    %83 = arith.truncf %82 : vector<4x2x2xf32> to vector<4x2x2xbf16>
    "tpu.trace_start"() <{level = 10 : i32, message = "nlm,nmd->nld"}> : () -> ()
    %cst_21 = arith.constant dense<0.000000e+00> : vector<4x2x8xf32>
    %84 = tpu.matmul %83, %71, %cst_21 {dimension_numbers = #tpu.dot_dimension_numbers<[2], [1], [1], [2], [0, 0, 0, 1, 1, 2], [0], [0]>} : vector<4x2x2xbf16>, vector<4x2x8xbf16>, vector<4x2x8xf32> -> vector<4x2x8xf32>
    "tpu.trace_stop"() : () -> ()
    %85 = tpu.concatenate %27, %46, %65, %84 in 2 : vector<4x2x8xf32>, vector<4x2x8xf32>, vector<4x2x8xf32>, vector<4x2x8xf32> -> vector<4x2x32xf32>
    %86 = vector.shape_cast %85 : vector<4x2x32xf32> to vector<8x32xf32>
    %87 = arith.truncf %86 : vector<8x32xf32> to vector<8x32xbf16>
    %c0_22 = arith.constant 0 : index
    %c0_23 = arith.constant 0 : index
    %88 = vector.load %arg4[%c0_22, %c0_23] : memref<32x32xbf16, #tpu.memory_space<vmem>>, vector<32x32xbf16>
    %cst_24 = arith.constant dense<0.000000e+00> : vector<8x32xf32>
    %89 = tpu.matmul %87, %88, %cst_24 {dimension_numbers = #tpu.dot_dimension_numbers<[1], [0], [0], [1], [0, 0, 1, 1], [], []>} : vector<8x32xbf16>, vector<32x32xbf16>, vector<8x32xf32> -> vector<8x32xf32>
    %90 = arith.addf %1, %89 : vector<8x32xf32>
    %c0_25 = arith.constant 0 : index
    %c0_26 = arith.constant 0 : index
    %91 = vector.load %arg5[%c0_25, %c0_26] : memref<1x32xf32, #tpu.memory_space<vmem>>, vector<1x32xf32>
    %92 = vector.broadcast %91 : vector<1x32xf32> to vector<8x32xf32>
    %93 = arith.addf %90, %92 : vector<8x32xf32>
    %c0_27 = arith.constant 0 : index
    %c0_28 = arith.constant 0 : index
    %94 = vector.load %arg6[%c0_27, %c0_28] : memref<1x32xf32, #tpu.memory_space<vmem>>, vector<1x32xf32>
    %c0_29 = arith.constant 0 : index
    %c0_30 = arith.constant 0 : index
    %95 = vector.load %arg7[%c0_29, %c0_30] : memref<1x32xf32, #tpu.memory_space<vmem>>, vector<1x32xf32>
    %cst_31 = arith.constant dense<0.000000e+00> : vector<8xf32>
    %96 = vector.multi_reduction <add>, %93, %cst_31 [1] : vector<8x32xf32> to vector<8xf32>
    %97 = vector.shape_cast %96 : vector<8xf32> to vector<8x1xf32>
    %cst_32 = arith.constant 3.200000e+01 : f32
    %98 = vector.broadcast %cst_32 : f32 to vector<8x1xf32>
    %99 = arith.divf %97, %98 : vector<8x1xf32>
    %100 = vector.broadcast %99 : vector<8x1xf32> to vector<8x32xf32>
    %101 = arith.subf %93, %100 : vector<8x32xf32>
    %102 = arith.mulf %101, %101 : vector<8x32xf32>
    %cst_33 = arith.constant dense<0.000000e+00> : vector<8xf32>
    %103 = vector.multi_reduction <add>, %102, %cst_33 [1] : vector<8x32xf32> to vector<8xf32>
    %104 = vector.shape_cast %103 : vector<8xf32> to vector<8x1xf32>
    %cst_34 = arith.constant 3.200000e+01 : f32
    %105 = vector.broadcast %cst_34 : f32 to vector<8x1xf32>
    %106 = arith.divf %104, %105 : vector<8x1xf32>
    %cst_35 = arith.constant 9.99999974E-6 : f32
    %107 = vector.broadcast %cst_35 : f32 to vector<8x1xf32>
    %108 = arith.addf %106, %107 : vector<8x1xf32>
    %109 = math.rsqrt %108 : vector<8x1xf32>
    %110 = vector.broadcast %109 : vector<8x1xf32> to vector<8x32xf32>
    %111 = arith.mulf %101, %110 : vector<8x32xf32>
    %112 = vector.broadcast %94 : vector<1x32xf32> to vector<8x32xf32>
    %113 = arith.mulf %111, %112 : vector<8x32xf32>
    %114 = vector.broadcast %95 : vector<1x32xf32> to vector<8x32xf32>
    %115 = arith.addf %113, %114 : vector<8x32xf32>
    %116 = arith.truncf %115 : vector<8x32xf32> to vector<8x32xbf16>
    %c0_36 = arith.constant 0 : index
    %c0_37 = arith.constant 0 : index
    %117 = vector.load %arg8[%c0_36, %c0_37] : memref<32x64xbf16, #tpu.memory_space<vmem>>, vector<32x64xbf16>
    %cst_38 = arith.constant dense<0.000000e+00> : vector<8x64xf32>
    %118 = tpu.matmul %116, %117, %cst_38 {dimension_numbers = #tpu.dot_dimension_numbers<[1], [0], [0], [1], [0, 0, 1, 1], [], []>} : vector<8x32xbf16>, vector<32x64xbf16>, vector<8x64xf32> -> vector<8x64xf32>
    %c0_39 = arith.constant 0 : index
    %c0_40 = arith.constant 0 : index
    %119 = vector.load %arg9[%c0_39, %c0_40] : memref<1x64xf32, #tpu.memory_space<vmem>>, vector<1x64xf32>
    %120 = vector.broadcast %119 : vector<1x64xf32> to vector<8x64xf32>
    %121 = arith.addf %118, %120 : vector<8x64xf32>
    %cst_41 = arith.constant 0.000000e+00 : f32
    %122 = vector.broadcast %cst_41 : f32 to vector<8x64xf32>
    %123 = arith.maximumf %121, %122 : vector<8x64xf32>
    %124 = arith.truncf %123 : vector<8x64xf32> to vector<8x64xbf16>
    %c0_42 = arith.constant 0 : index
    %c0_43 = arith.constant 0 : index
    %125 = vector.load %arg10[%c0_42, %c0_43] : memref<64x32xbf16, #tpu.memory_space<vmem>>, vector<64x32xbf16>
    %cst_44 = arith.constant dense<0.000000e+00> : vector<8x32xf32>
    %126 = tpu.matmul %124, %125, %cst_44 {dimension_numbers = #tpu.dot_dimension_numbers<[1], [0], [0], [1], [0, 0, 1, 1], [], []>} : vector<8x64xbf16>, vector<64x32xbf16>, vector<8x32xf32> -> vector<8x32xf32>
    %127 = arith.addf %115, %126 : vector<8x32xf32>
    %c0_45 = arith.constant 0 : index
    %c0_46 = arith.constant 0 : index
    %128 = vector.load %arg11[%c0_45, %c0_46] : memref<1x32xf32, #tpu.memory_space<vmem>>, vector<1x32xf32>
    %129 = vector.broadcast %128 : vector<1x32xf32> to vector<8x32xf32>
    %130 = arith.addf %127, %129 : vector<8x32xf32>
    %c0_47 = arith.constant 0 : index
    %c0_48 = arith.constant 0 : index
    %131 = vector.load %arg12[%c0_47, %c0_48] : memref<1x32xf32, #tpu.memory_space<vmem>>, vector<1x32xf32>
    %c0_49 = arith.constant 0 : index
    %c0_50 = arith.constant 0 : index
    %132 = vector.load %arg13[%c0_49, %c0_50] : memref<1x32xf32, #tpu.memory_space<vmem>>, vector<1x32xf32>
    %cst_51 = arith.constant dense<0.000000e+00> : vector<8xf32>
    %133 = vector.multi_reduction <add>, %130, %cst_51 [1] : vector<8x32xf32> to vector<8xf32>
    %134 = vector.shape_cast %133 : vector<8xf32> to vector<8x1xf32>
    %cst_52 = arith.constant 3.200000e+01 : f32
    %135 = vector.broadcast %cst_52 : f32 to vector<8x1xf32>
    %136 = arith.divf %134, %135 : vector<8x1xf32>
    %137 = vector.broadcast %136 : vector<8x1xf32> to vector<8x32xf32>
    %138 = arith.subf %130, %137 : vector<8x32xf32>
    %139 = arith.mulf %138, %138 : vector<8x32xf32>
    %cst_53 = arith.constant dense<0.000000e+00> : vector<8xf32>
    %140 = vector.multi_reduction <add>, %139, %cst_53 [1] : vector<8x32xf32> to vector<8xf32>
    %141 = vector.shape_cast %140 : vector<8xf32> to vector<8x1xf32>
    %cst_54 = arith.constant 3.200000e+01 : f32
    %142 = vector.broadcast %cst_54 : f32 to vector<8x1xf32>
    %143 = arith.divf %141, %142 : vector<8x1xf32>
    %cst_55 = arith.constant 9.99999974E-6 : f32
    %144 = vector.broadcast %cst_55 : f32 to vector<8x1xf32>
    %145 = arith.addf %143, %144 : vector<8x1xf32>
    %146 = math.rsqrt %145 : vector<8x1xf32>
    %147 = vector.broadcast %146 : vector<8x1xf32> to vector<8x32xf32>
    %148 = arith.mulf %138, %147 : vector<8x32xf32>
    %149 = vector.broadcast %131 : vector<1x32xf32> to vector<8x32xf32>
    %150 = arith.mulf %148, %149 : vector<8x32xf32>
    %151 = vector.broadcast %132 : vector<1x32xf32> to vector<8x32xf32>
    %152 = arith.addf %150, %151 : vector<8x32xf32>
    %153 = vector.shape_cast %152 : vector<8x32xf32> to vector<4x2x32xf32>
    %c0_56 = arith.constant 0 : index
    %c0_57 = arith.constant 0 : index
    %c0_58 = arith.constant 0 : index
    %154 = vector.load %arg14[%c0_56, %c0_57, %c0_58] : memref<4x2x32xf32, #tpu.memory_space<vmem>>, vector<4x2x32xf32>
    tpu.vector_store %arg14[%c0_56, %c0_57, %c0_58], %153 {strides = array<i32>} : memref<4x2x32xf32, #tpu.memory_space<vmem>>, vector<4x2x32xf32>,
    return
  }
  func.func @transform_0(%arg0: i32) -> (i32, i32, i32) {
    %c0_i32 = arith.constant 0 : i32
    %c0_i32_0 = arith.constant 0 : i32
    %c0_i32_1 = arith.constant 0 : i32
    return %arg0, %c0_i32, %c0_i32_0 : i32, i32, i32
  }
  func.func @transform_1(%arg0: i32) -> (i32, i32) {
    %c0_i32 = arith.constant 0 : i32
    %c0_i32_0 = arith.constant 0 : i32
    %c0_i32_1 = arith.constant 0 : i32
    return %c0_i32, %c0_i32_0 : i32, i32
  }
  func.func @transform_2(%arg0: i32) -> (i32, i32) {
    %c0_i32 = arith.constant 0 : i32
    %c0_i32_0 = arith.constant 0 : i32
    %c0_i32_1 = arith.constant 0 : i32
    return %c0_i32, %c0_i32_0 : i32, i32
  }
  func.func @transform_3(%arg0: i32) -> (i32, i32) {
    %c0_i32 = arith.constant 0 : i32
    %c0_i32_0 = arith.constant 0 : i32
    %c0_i32_1 = arith.constant 0 : i32
    return %c0_i32, %c0_i32_0 : i32, i32
  }
  func.func @transform_4(%arg0: i32) -> (i32, i32) {
    %c0_i32 = arith.constant 0 : i32
    %c0_i32_0 = arith.constant 0 : i32
    %c0_i32_1 = arith.constant 0 : i32
    return %c0_i32, %c0_i32_0 : i32, i32
  }
  func.func @transform_5(%arg0: i32) -> (i32, i32) {
    %c0_i32 = arith.constant 0 : i32
    %c0_i32_0 = arith.constant 0 : i32
    %c0_i32_1 = arith.constant 0 : i32
    return %c0_i32, %c0_i32_0 : i32, i32
  }
  func.func @transform_6(%arg0: i32) -> (i32, i32) {
    %c0_i32 = arith.constant 0 : i32
    %c0_i32_0 = arith.constant 0 : i32
    %c0_i32_1 = arith.constant 0 : i32
    return %c0_i32, %c0_i32_0 : i32, i32
  }
  func.func @transform_7(%arg0: i32) -> (i32, i32) {
    %c0_i32 = arith.constant 0 : i32
    %c0_i32_0 = arith.constant 0 : i32
    %c0_i32_1 = arith.constant 0 : i32
    return %c0_i32, %c0_i32_0 : i32, i32
  }
  func.func @transform_8(%arg0: i32) -> (i32, i32) {
    %c0_i32 = arith.constant 0 : i32
    %c0_i32_0 = arith.constant 0 : i32
    %c0_i32_1 = arith.constant 0 : i32
    return %c0_i32, %c0_i32_0 : i32, i32
  }
  func.func @transform_9(%arg0: i32) -> (i32, i32) {
    %c0_i32 = arith.constant 0 : i32
    %c0_i32_0 = arith.constant 0 : i32
    %c0_i32_1 = arith.constant 0 : i32
    return %c0_i32, %c0_i32_0 : i32, i32
  }
  func.func @transform_10(%arg0: i32) -> (i32, i32) {
    %c0_i32 = arith.constant 0 : i32
    %c0_i32_0 = arith.constant 0 : i32
    %c0_i32_1 = arith.constant 0 : i32
    return %c0_i32, %c0_i32_0 : i32, i32
  }
  func.func @transform_11(%arg0: i32) -> (i32, i32) {
    %c0_i32 = arith.constant 0 : i32
    %c0_i32_0 = arith.constant 0 : i32
    %c0_i32_1 = arith.constant 0 : i32
    return %c0_i32, %c0_i32_0 : i32, i32
  }
  func.func @transform_12(%arg0: i32) -> (i32, i32) {
    %c0_i32 = arith.constant 0 : i32
    %c0_i32_0 = arith.constant 0 : i32
    %c0_i32_1 = arith.constant 0 : i32
    return %c0_i32, %c0_i32_0 : i32, i32
  }
  func.func @transform_13(%arg0: i32) -> (i32, i32, i32) {
    %c0_i32 = arith.constant 0 : i32
    %c0_i32_0 = arith.constant 0 : i32
    %c0_i32_1 = arith.constant 0 : i32
    return %arg0, %c0_i32, %c0_i32_0 : i32, i32, i32
  }
}

module attributes {stable_mosaic.version = 11 : i64} {
  func.func @_embed_kernel(%arg0: i32, %arg1: memref<1x8x4xf32, #tpu.memory_space<vmem>>, %arg2: memref<4x32xbf16, #tpu.memory_space<vmem>>, %arg3: memref<4x32xbf16, #tpu.memory_space<vmem>>, %arg4: memref<4x32xbf16, #tpu.memory_space<vmem>>, %arg5: memref<8x32xf32, #tpu.memory_space<vmem>>, %arg6: memref<1x8x32xf32, #tpu.memory_space<vmem>>) attributes {dimension_semantics = [#tpu.dimension_semantics<parallel>], iteration_bounds = array<i64: 2>, scalar_prefetch = 0 : i64, scratch_operands = 0 : i64, tpu.core_type = #tpu.core_type<tc>, window_params = [{transform_indices = @transform_0, window_bounds = array<i64: 1, 8, 4>}, {pipeline_mode = #tpu.pipeline_mode<synchronous>, transform_indices = @transform_1, window_bounds = array<i64: 4, 32>}, {pipeline_mode = #tpu.pipeline_mode<synchronous>, transform_indices = @transform_2, window_bounds = array<i64: 4, 32>}, {pipeline_mode = #tpu.pipeline_mode<synchronous>, transform_indices = @transform_3, window_bounds = array<i64: 4, 32>}, {pipeline_mode = #tpu.pipeline_mode<synchronous>, transform_indices = @transform_4, window_bounds = array<i64: 8, 32>}, {transform_indices = @transform_5, window_bounds = array<i64: 1, 8, 32>}]} {
    %c0 = arith.constant 0 : index
    %c0_0 = arith.constant 0 : index
    %c0_1 = arith.constant 0 : index
    %0 = vector.load %arg1[%c0, %c0_0, %c0_1] : memref<1x8x4xf32, #tpu.memory_space<vmem>>, vector<1x8x4xf32>
    %1 = vector.shape_cast %0 : vector<1x8x4xf32> to vector<8x4xf32>
    %2 = vector.extract_strided_slice %1 {offsets = [7, 0], sizes = [1, 4], strides = [1, 1]} : vector<8x4xf32> to vector<1x4xf32>
    %3 = vector.extract_strided_slice %1 {offsets = [0, 0], sizes = [7, 4], strides = [1, 1]} : vector<8x4xf32> to vector<7x4xf32>
    %4 = tpu.concatenate %2, %3 in 0 : vector<1x4xf32>, vector<7x4xf32> -> vector<8x4xf32>
    %5 = vector.extract_strided_slice %1 {offsets = [1, 0], sizes = [7, 4], strides = [1, 1]} : vector<8x4xf32> to vector<7x4xf32>
    %6 = vector.extract_strided_slice %1 {offsets = [0, 0], sizes = [1, 4], strides = [1, 1]} : vector<8x4xf32> to vector<1x4xf32>
    %7 = tpu.concatenate %5, %6 in 0 : vector<7x4xf32>, vector<1x4xf32> -> vector<8x4xf32>
    %8 = arith.truncf %4 : vector<8x4xf32> to vector<8x4xbf16>
    %c0_2 = arith.constant 0 : index
    %c0_3 = arith.constant 0 : index
    %9 = vector.load %arg2[%c0_2, %c0_3] : memref<4x32xbf16, #tpu.memory_space<vmem>>, vector<4x32xbf16>
    %cst = arith.constant dense<0.000000e+00> : vector<8x32xf32>
    %10 = tpu.matmul %8, %9, %cst {dimension_numbers = #tpu.dot_dimension_numbers<[1], [0], [0], [1], [0, 0, 1, 1], [], []>} : vector<8x4xbf16>, vector<4x32xbf16>, vector<8x32xf32> -> vector<8x32xf32>
    %11 = arith.truncf %1 : vector<8x4xf32> to vector<8x4xbf16>
    %c0_4 = arith.constant 0 : index
    %c0_5 = arith.constant 0 : index
    %12 = vector.load %arg3[%c0_4, %c0_5] : memref<4x32xbf16, #tpu.memory_space<vmem>>, vector<4x32xbf16>
    %cst_6 = arith.constant dense<0.000000e+00> : vector<8x32xf32>
    %13 = tpu.matmul %11, %12, %cst_6 {dimension_numbers = #tpu.dot_dimension_numbers<[1], [0], [0], [1], [0, 0, 1, 1], [], []>} : vector<8x4xbf16>, vector<4x32xbf16>, vector<8x32xf32> -> vector<8x32xf32>
    %14 = arith.addf %10, %13 : vector<8x32xf32>
    %15 = arith.truncf %7 : vector<8x4xf32> to vector<8x4xbf16>
    %c0_7 = arith.constant 0 : index
    %c0_8 = arith.constant 0 : index
    %16 = vector.load %arg4[%c0_7, %c0_8] : memref<4x32xbf16, #tpu.memory_space<vmem>>, vector<4x32xbf16>
    %cst_9 = arith.constant dense<0.000000e+00> : vector<8x32xf32>
    %17 = tpu.matmul %15, %16, %cst_9 {dimension_numbers = #tpu.dot_dimension_numbers<[1], [0], [0], [1], [0, 0, 1, 1], [], []>} : vector<8x4xbf16>, vector<4x32xbf16>, vector<8x32xf32> -> vector<8x32xf32>
    %18 = arith.addf %14, %17 : vector<8x32xf32>
    %c0_10 = arith.constant 0 : index
    %c0_11 = arith.constant 0 : index
    %19 = vector.load %arg5[%c0_10, %c0_11] : memref<8x32xf32, #tpu.memory_space<vmem>>, vector<8x32xf32>
    %20 = arith.addf %18, %19 : vector<8x32xf32>
    %21 = vector.shape_cast %20 : vector<8x32xf32> to vector<1x8x32xf32>
    %c0_12 = arith.constant 0 : index
    %c0_13 = arith.constant 0 : index
    %c0_14 = arith.constant 0 : index
    %22 = vector.load %arg6[%c0_12, %c0_13, %c0_14] : memref<1x8x32xf32, #tpu.memory_space<vmem>>, vector<1x8x32xf32>
    tpu.vector_store %arg6[%c0_12, %c0_13, %c0_14], %21 {strides = array<i32>} : memref<1x8x32xf32, #tpu.memory_space<vmem>>, vector<1x8x32xf32>,
    return
  }
  func.func @transform_0(%arg0: i32) -> (i32, i32, i32) {
    %c0_i32 = arith.constant 0 : i32
    %c0_i32_0 = arith.constant 0 : i32
    %c0_i32_1 = arith.constant 0 : i32
    return %arg0, %c0_i32, %c0_i32_0 : i32, i32, i32
  }
  func.func @transform_1(%arg0: i32) -> (i32, i32) {
    %c0_i32 = arith.constant 0 : i32
    %c0_i32_0 = arith.constant 0 : i32
    %c0_i32_1 = arith.constant 0 : i32
    return %c0_i32, %c0_i32_0 : i32, i32
  }
  func.func @transform_2(%arg0: i32) -> (i32, i32) {
    %c0_i32 = arith.constant 0 : i32
    %c0_i32_0 = arith.constant 0 : i32
    %c0_i32_1 = arith.constant 0 : i32
    return %c0_i32, %c0_i32_0 : i32, i32
  }
  func.func @transform_3(%arg0: i32) -> (i32, i32) {
    %c0_i32 = arith.constant 0 : i32
    %c0_i32_0 = arith.constant 0 : i32
    %c0_i32_1 = arith.constant 0 : i32
    return %c0_i32, %c0_i32_0 : i32, i32
  }
  func.func @transform_4(%arg0: i32) -> (i32, i32) {
    %c0_i32 = arith.constant 0 : i32
    %c0_i32_0 = arith.constant 0 : i32
    %c0_i32_1 = arith.constant 0 : i32
    return %c0_i32, %c0_i32_0 : i32, i32
  }
  func.func @transform_5(%arg0: i32) -> (i32, i32, i32) {
    %c0_i32 = arith.constant 0 : i32
    %c0_i32_0 = arith.constant 0 : i32
    %c0_i32_1 = arith.constant 0 : i32
    return %arg0, %c0_i32, %c0_i32_0 : i32, i32, i32
  }
}

module attributes {stable_mosaic.version = 11 : i64} {
  func.func @_cnn_block_kernel(%arg0: i32, %arg1: memref<1x8x32xf32, #tpu.memory_space<vmem>>, %arg2: memref<32x32xbf16, #tpu.memory_space<vmem>>, %arg3: memref<32x32xbf16, #tpu.memory_space<vmem>>, %arg4: memref<32x32xbf16, #tpu.memory_space<vmem>>, %arg5: memref<1x32xf32, #tpu.memory_space<vmem>>, %arg6: memref<8x1xf32, #tpu.memory_space<vmem>>, %arg7: memref<8x1xf32, #tpu.memory_space<vmem>>, %arg8: memref<32x16xf32, #tpu.memory_space<vmem>>, %arg9: memref<32x16xf32, #tpu.memory_space<vmem>>, %arg10: memref<1x8x16xf32, #tpu.memory_space<vmem>>) attributes {dimension_semantics = [#tpu.dimension_semantics<parallel>], iteration_bounds = array<i64: 2>, scalar_prefetch = 0 : i64, scratch_operands = 0 : i64, tpu.core_type = #tpu.core_type<tc>, window_params = [{transform_indices = @transform_0, window_bounds = array<i64: 1, 8, 32>}, {pipeline_mode = #tpu.pipeline_mode<synchronous>, transform_indices = @transform_1, window_bounds = array<i64: 32, 32>}, {pipeline_mode = #tpu.pipeline_mode<synchronous>, transform_indices = @transform_2, window_bounds = array<i64: 32, 32>}, {pipeline_mode = #tpu.pipeline_mode<synchronous>, transform_indices = @transform_3, window_bounds = array<i64: 32, 32>}, {pipeline_mode = #tpu.pipeline_mode<synchronous>, transform_indices = @transform_4, window_bounds = array<i64: 1, 32>}, {pipeline_mode = #tpu.pipeline_mode<synchronous>, transform_indices = @transform_5, window_bounds = array<i64: 8, 1>}, {pipeline_mode = #tpu.pipeline_mode<synchronous>, transform_indices = @transform_6, window_bounds = array<i64: 8, 1>}, {pipeline_mode = #tpu.pipeline_mode<synchronous>, transform_indices = @transform_7, window_bounds = array<i64: 32, 16>}, {pipeline_mode = #tpu.pipeline_mode<synchronous>, transform_indices = @transform_8, window_bounds = array<i64: 32, 16>}, {transform_indices = @transform_9, window_bounds = array<i64: 1, 8, 16>}]} {
    %c0 = arith.constant 0 : index
    %c0_0 = arith.constant 0 : index
    %c0_1 = arith.constant 0 : index
    %0 = vector.load %arg1[%c0, %c0_0, %c0_1] : memref<1x8x32xf32, #tpu.memory_space<vmem>>, vector<1x8x32xf32>
    %1 = vector.shape_cast %0 : vector<1x8x32xf32> to vector<8x32xf32>
    %cst = arith.constant 0.000000e+00 : f32
    %2 = vector.broadcast %cst : f32 to vector<1x32xf32>
    %3 = vector.extract_strided_slice %1 {offsets = [0, 0], sizes = [7, 32], strides = [1, 1]} : vector<8x32xf32> to vector<7x32xf32>
    %4 = tpu.concatenate %2, %3 in 0 : vector<1x32xf32>, vector<7x32xf32> -> vector<8x32xf32>
    %5 = vector.extract_strided_slice %1 {offsets = [1, 0], sizes = [7, 32], strides = [1, 1]} : vector<8x32xf32> to vector<7x32xf32>
    %6 = tpu.concatenate %5, %2 in 0 : vector<7x32xf32>, vector<1x32xf32> -> vector<8x32xf32>
    %7 = arith.truncf %4 : vector<8x32xf32> to vector<8x32xbf16>
    %c0_2 = arith.constant 0 : index
    %c0_3 = arith.constant 0 : index
    %8 = vector.load %arg2[%c0_2, %c0_3] : memref<32x32xbf16, #tpu.memory_space<vmem>>, vector<32x32xbf16>
    %cst_4 = arith.constant dense<0.000000e+00> : vector<8x32xf32>
    %9 = tpu.matmul %7, %8, %cst_4 {dimension_numbers = #tpu.dot_dimension_numbers<[1], [0], [0], [1], [0, 0, 1, 1], [], []>} : vector<8x32xbf16>, vector<32x32xbf16>, vector<8x32xf32> -> vector<8x32xf32>
    %10 = arith.truncf %1 : vector<8x32xf32> to vector<8x32xbf16>
    %c0_5 = arith.constant 0 : index
    %c0_6 = arith.constant 0 : index
    %11 = vector.load %arg3[%c0_5, %c0_6] : memref<32x32xbf16, #tpu.memory_space<vmem>>, vector<32x32xbf16>
    %cst_7 = arith.constant dense<0.000000e+00> : vector<8x32xf32>
    %12 = tpu.matmul %10, %11, %cst_7 {dimension_numbers = #tpu.dot_dimension_numbers<[1], [0], [0], [1], [0, 0, 1, 1], [], []>} : vector<8x32xbf16>, vector<32x32xbf16>, vector<8x32xf32> -> vector<8x32xf32>
    %13 = arith.addf %9, %12 : vector<8x32xf32>
    %14 = arith.truncf %6 : vector<8x32xf32> to vector<8x32xbf16>
    %c0_8 = arith.constant 0 : index
    %c0_9 = arith.constant 0 : index
    %15 = vector.load %arg4[%c0_8, %c0_9] : memref<32x32xbf16, #tpu.memory_space<vmem>>, vector<32x32xbf16>
    %cst_10 = arith.constant dense<0.000000e+00> : vector<8x32xf32>
    %16 = tpu.matmul %14, %15, %cst_10 {dimension_numbers = #tpu.dot_dimension_numbers<[1], [0], [0], [1], [0, 0, 1, 1], [], []>} : vector<8x32xbf16>, vector<32x32xbf16>, vector<8x32xf32> -> vector<8x32xf32>
    %17 = arith.addf %13, %16 : vector<8x32xf32>
    %c0_11 = arith.constant 0 : index
    %c0_12 = arith.constant 0 : index
    %18 = vector.load %arg5[%c0_11, %c0_12] : memref<1x32xf32, #tpu.memory_space<vmem>>, vector<1x32xf32>
    %19 = vector.broadcast %18 : vector<1x32xf32> to vector<8x32xf32>
    %20 = arith.addf %17, %19 : vector<8x32xf32>
    %c0_13 = arith.constant 0 : index
    %c0_14 = arith.constant 0 : index
    %21 = vector.load %arg6[%c0_13, %c0_14] : memref<8x1xf32, #tpu.memory_space<vmem>>, vector<8x1xf32>
    %22 = vector.broadcast %21 : vector<8x1xf32> to vector<8x32xf32>
    %23 = arith.mulf %20, %22 : vector<8x32xf32>
    %c0_15 = arith.constant 0 : index
    %c0_16 = arith.constant 0 : index
    %24 = vector.load %arg7[%c0_15, %c0_16] : memref<8x1xf32, #tpu.memory_space<vmem>>, vector<8x1xf32>
    %25 = vector.broadcast %24 : vector<8x1xf32> to vector<8x32xf32>
    %26 = arith.addf %23, %25 : vector<8x32xf32>
    %cst_17 = arith.constant 0.000000e+00 : f32
    %27 = vector.broadcast %cst_17 : f32 to vector<8x32xf32>
    %28 = arith.maximumf %26, %27 : vector<8x32xf32>
    %c0_18 = arith.constant 0 : index
    %c0_19 = arith.constant 0 : index
    %29 = vector.load %arg8[%c0_18, %c0_19] : memref<32x16xf32, #tpu.memory_space<vmem>>, vector<32x16xf32>
    %cst_20 = arith.constant dense<0.000000e+00> : vector<8x16xf32>
    %30 = tpu.matmul %28, %29, %cst_20 {dimension_numbers = #tpu.dot_dimension_numbers<[1], [0], [0], [1], [0, 0, 1, 1], [], []>} : vector<8x32xf32>, vector<32x16xf32>, vector<8x16xf32> -> vector<8x16xf32>
    %c0_21 = arith.constant 0 : index
    %c0_22 = arith.constant 0 : index
    %31 = vector.load %arg9[%c0_21, %c0_22] : memref<32x16xf32, #tpu.memory_space<vmem>>, vector<32x16xf32>
    %cst_23 = arith.constant dense<0.000000e+00> : vector<8x16xf32>
    %32 = tpu.matmul %28, %31, %cst_23 {dimension_numbers = #tpu.dot_dimension_numbers<[1], [0], [0], [1], [0, 0, 1, 1], [], []>} : vector<8x32xf32>, vector<32x16xf32>, vector<8x16xf32> -> vector<8x16xf32>
    %33 = arith.maximumf %30, %32 : vector<8x16xf32>
    %34 = vector.shape_cast %33 : vector<8x16xf32> to vector<1x8x16xf32>
    %c0_24 = arith.constant 0 : index
    %c0_25 = arith.constant 0 : index
    %c0_26 = arith.constant 0 : index
    %35 = vector.load %arg10[%c0_24, %c0_25, %c0_26] : memref<1x8x16xf32, #tpu.memory_space<vmem>>, vector<1x8x16xf32>
    tpu.vector_store %arg10[%c0_24, %c0_25, %c0_26], %34 {strides = array<i32>} : memref<1x8x16xf32, #tpu.memory_space<vmem>>, vector<1x8x16xf32>,
    return
  }
  func.func @transform_0(%arg0: i32) -> (i32, i32, i32) {
    %c0_i32 = arith.constant 0 : i32
    %c0_i32_0 = arith.constant 0 : i32
    %c0_i32_1 = arith.constant 0 : i32
    return %arg0, %c0_i32, %c0_i32_0 : i32, i32, i32
  }
  func.func @transform_1(%arg0: i32) -> (i32, i32) {
    %c0_i32 = arith.constant 0 : i32
    %c0_i32_0 = arith.constant 0 : i32
    %c0_i32_1 = arith.constant 0 : i32
    return %c0_i32, %c0_i32_0 : i32, i32
  }
  func.func @transform_2(%arg0: i32) -> (i32, i32) {
    %c0_i32 = arith.constant 0 : i32
    %c0_i32_0 = arith.constant 0 : i32
    %c0_i32_1 = arith.constant 0 : i32
    return %c0_i32, %c0_i32_0 : i32, i32
  }
  func.func @transform_3(%arg0: i32) -> (i32, i32) {
    %c0_i32 = arith.constant 0 : i32
    %c0_i32_0 = arith.constant 0 : i32
    %c0_i32_1 = arith.constant 0 : i32
    return %c0_i32, %c0_i32_0 : i32, i32
  }
  func.func @transform_4(%arg0: i32) -> (i32, i32) {
    %c0_i32 = arith.constant 0 : i32
    %c0_i32_0 = arith.constant 0 : i32
    %c0_i32_1 = arith.constant 0 : i32
    return %c0_i32, %c0_i32_0 : i32, i32
  }
  func.func @transform_5(%arg0: i32) -> (i32, i32) {
    %c0_i32 = arith.constant 0 : i32
    %c0_i32_0 = arith.constant 0 : i32
    %c0_i32_1 = arith.constant 0 : i32
    return %c0_i32, %c0_i32_0 : i32, i32
  }
  func.func @transform_6(%arg0: i32) -> (i32, i32) {
    %c0_i32 = arith.constant 0 : i32
    %c0_i32_0 = arith.constant 0 : i32
    %c0_i32_1 = arith.constant 0 : i32
    return %c0_i32, %c0_i32_0 : i32, i32
  }
  func.func @transform_7(%arg0: i32) -> (i32, i32) {
    %c0_i32 = arith.constant 0 : i32
    %c0_i32_0 = arith.constant 0 : i32
    %c0_i32_1 = arith.constant 0 : i32
    return %c0_i32, %c0_i32_0 : i32, i32
  }
  func.func @transform_8(%arg0: i32) -> (i32, i32) {
    %c0_i32 = arith.constant 0 : i32
    %c0_i32_0 = arith.constant 0 : i32
    %c0_i32_1 = arith.constant 0 : i32
    return %c0_i32, %c0_i32_0 : i32, i32
  }
  func.func @transform_9(%arg0: i32) -> (i32, i32, i32) {
    %c0_i32 = arith.constant 0 : i32
    %c0_i32_0 = arith.constant 0 : i32
    %c0_i32_1 = arith.constant 0 : i32
    return %arg0, %c0_i32, %c0_i32_0 : i32, i32, i32
  }
}

module attributes {stable_mosaic.version = 11 : i64} {
  func.func @_cnn_block_kernel(%arg0: i32, %arg1: memref<1x8x16xf32, #tpu.memory_space<vmem>>, %arg2: memref<16x16xbf16, #tpu.memory_space<vmem>>, %arg3: memref<16x16xbf16, #tpu.memory_space<vmem>>, %arg4: memref<16x16xbf16, #tpu.memory_space<vmem>>, %arg5: memref<1x16xf32, #tpu.memory_space<vmem>>, %arg6: memref<8x1xf32, #tpu.memory_space<vmem>>, %arg7: memref<8x1xf32, #tpu.memory_space<vmem>>, %arg8: memref<16x8xf32, #tpu.memory_space<vmem>>, %arg9: memref<16x8xf32, #tpu.memory_space<vmem>>, %arg10: memref<1x8x8xf32, #tpu.memory_space<vmem>>) attributes {dimension_semantics = [#tpu.dimension_semantics<parallel>], iteration_bounds = array<i64: 2>, scalar_prefetch = 0 : i64, scratch_operands = 0 : i64, tpu.core_type = #tpu.core_type<tc>, window_params = [{transform_indices = @transform_0, window_bounds = array<i64: 1, 8, 16>}, {pipeline_mode = #tpu.pipeline_mode<synchronous>, transform_indices = @transform_1, window_bounds = array<i64: 16, 16>}, {pipeline_mode = #tpu.pipeline_mode<synchronous>, transform_indices = @transform_2, window_bounds = array<i64: 16, 16>}, {pipeline_mode = #tpu.pipeline_mode<synchronous>, transform_indices = @transform_3, window_bounds = array<i64: 16, 16>}, {pipeline_mode = #tpu.pipeline_mode<synchronous>, transform_indices = @transform_4, window_bounds = array<i64: 1, 16>}, {pipeline_mode = #tpu.pipeline_mode<synchronous>, transform_indices = @transform_5, window_bounds = array<i64: 8, 1>}, {pipeline_mode = #tpu.pipeline_mode<synchronous>, transform_indices = @transform_6, window_bounds = array<i64: 8, 1>}, {pipeline_mode = #tpu.pipeline_mode<synchronous>, transform_indices = @transform_7, window_bounds = array<i64: 16, 8>}, {pipeline_mode = #tpu.pipeline_mode<synchronous>, transform_indices = @transform_8, window_bounds = array<i64: 16, 8>}, {transform_indices = @transform_9, window_bounds = array<i64: 1, 8, 8>}]} {
    %c0 = arith.constant 0 : index
    %c0_0 = arith.constant 0 : index
    %c0_1 = arith.constant 0 : index
    %0 = vector.load %arg1[%c0, %c0_0, %c0_1] : memref<1x8x16xf32, #tpu.memory_space<vmem>>, vector<1x8x16xf32>
    %1 = vector.shape_cast %0 : vector<1x8x16xf32> to vector<8x16xf32>
    %cst = arith.constant 0.000000e+00 : f32
    %2 = vector.broadcast %cst : f32 to vector<1x16xf32>
    %3 = vector.extract_strided_slice %1 {offsets = [0, 0], sizes = [7, 16], strides = [1, 1]} : vector<8x16xf32> to vector<7x16xf32>
    %4 = tpu.concatenate %2, %3 in 0 : vector<1x16xf32>, vector<7x16xf32> -> vector<8x16xf32>
    %5 = vector.extract_strided_slice %1 {offsets = [1, 0], sizes = [7, 16], strides = [1, 1]} : vector<8x16xf32> to vector<7x16xf32>
    %6 = tpu.concatenate %5, %2 in 0 : vector<7x16xf32>, vector<1x16xf32> -> vector<8x16xf32>
    %7 = arith.truncf %4 : vector<8x16xf32> to vector<8x16xbf16>
    %c0_2 = arith.constant 0 : index
    %c0_3 = arith.constant 0 : index
    %8 = vector.load %arg2[%c0_2, %c0_3] : memref<16x16xbf16, #tpu.memory_space<vmem>>, vector<16x16xbf16>
    %cst_4 = arith.constant dense<0.000000e+00> : vector<8x16xf32>
    %9 = tpu.matmul %7, %8, %cst_4 {dimension_numbers = #tpu.dot_dimension_numbers<[1], [0], [0], [1], [0, 0, 1, 1], [], []>} : vector<8x16xbf16>, vector<16x16xbf16>, vector<8x16xf32> -> vector<8x16xf32>
    %10 = arith.truncf %1 : vector<8x16xf32> to vector<8x16xbf16>
    %c0_5 = arith.constant 0 : index
    %c0_6 = arith.constant 0 : index
    %11 = vector.load %arg3[%c0_5, %c0_6] : memref<16x16xbf16, #tpu.memory_space<vmem>>, vector<16x16xbf16>
    %cst_7 = arith.constant dense<0.000000e+00> : vector<8x16xf32>
    %12 = tpu.matmul %10, %11, %cst_7 {dimension_numbers = #tpu.dot_dimension_numbers<[1], [0], [0], [1], [0, 0, 1, 1], [], []>} : vector<8x16xbf16>, vector<16x16xbf16>, vector<8x16xf32> -> vector<8x16xf32>
    %13 = arith.addf %9, %12 : vector<8x16xf32>
    %14 = arith.truncf %6 : vector<8x16xf32> to vector<8x16xbf16>
    %c0_8 = arith.constant 0 : index
    %c0_9 = arith.constant 0 : index
    %15 = vector.load %arg4[%c0_8, %c0_9] : memref<16x16xbf16, #tpu.memory_space<vmem>>, vector<16x16xbf16>
    %cst_10 = arith.constant dense<0.000000e+00> : vector<8x16xf32>
    %16 = tpu.matmul %14, %15, %cst_10 {dimension_numbers = #tpu.dot_dimension_numbers<[1], [0], [0], [1], [0, 0, 1, 1], [], []>} : vector<8x16xbf16>, vector<16x16xbf16>, vector<8x16xf32> -> vector<8x16xf32>
    %17 = arith.addf %13, %16 : vector<8x16xf32>
    %c0_11 = arith.constant 0 : index
    %c0_12 = arith.constant 0 : index
    %18 = vector.load %arg5[%c0_11, %c0_12] : memref<1x16xf32, #tpu.memory_space<vmem>>, vector<1x16xf32>
    %19 = vector.broadcast %18 : vector<1x16xf32> to vector<8x16xf32>
    %20 = arith.addf %17, %19 : vector<8x16xf32>
    %c0_13 = arith.constant 0 : index
    %c0_14 = arith.constant 0 : index
    %21 = vector.load %arg6[%c0_13, %c0_14] : memref<8x1xf32, #tpu.memory_space<vmem>>, vector<8x1xf32>
    %22 = vector.broadcast %21 : vector<8x1xf32> to vector<8x16xf32>
    %23 = arith.mulf %20, %22 : vector<8x16xf32>
    %c0_15 = arith.constant 0 : index
    %c0_16 = arith.constant 0 : index
    %24 = vector.load %arg7[%c0_15, %c0_16] : memref<8x1xf32, #tpu.memory_space<vmem>>, vector<8x1xf32>
    %25 = vector.broadcast %24 : vector<8x1xf32> to vector<8x16xf32>
    %26 = arith.addf %23, %25 : vector<8x16xf32>
    %cst_17 = arith.constant 0.000000e+00 : f32
    %27 = vector.broadcast %cst_17 : f32 to vector<8x16xf32>
    %28 = arith.maximumf %26, %27 : vector<8x16xf32>
    %c0_18 = arith.constant 0 : index
    %c0_19 = arith.constant 0 : index
    %29 = vector.load %arg8[%c0_18, %c0_19] : memref<16x8xf32, #tpu.memory_space<vmem>>, vector<16x8xf32>
    %cst_20 = arith.constant dense<0.000000e+00> : vector<8x8xf32>
    %30 = tpu.matmul %28, %29, %cst_20 {dimension_numbers = #tpu.dot_dimension_numbers<[1], [0], [0], [1], [0, 0, 1, 1], [], []>} : vector<8x16xf32>, vector<16x8xf32>, vector<8x8xf32> -> vector<8x8xf32>
    %c0_21 = arith.constant 0 : index
    %c0_22 = arith.constant 0 : index
    %31 = vector.load %arg9[%c0_21, %c0_22] : memref<16x8xf32, #tpu.memory_space<vmem>>, vector<16x8xf32>
    %cst_23 = arith.constant dense<0.000000e+00> : vector<8x8xf32>
    %32 = tpu.matmul %28, %31, %cst_23 {dimension_numbers = #tpu.dot_dimension_numbers<[1], [0], [0], [1], [0, 0, 1, 1], [], []>} : vector<8x16xf32>, vector<16x8xf32>, vector<8x8xf32> -> vector<8x8xf32>
    %33 = arith.maximumf %30, %32 : vector<8x8xf32>
    %34 = vector.shape_cast %33 : vector<8x8xf32> to vector<1x8x8xf32>
    %c0_24 = arith.constant 0 : index
    %c0_25 = arith.constant 0 : index
    %c0_26 = arith.constant 0 : index
    %35 = vector.load %arg10[%c0_24, %c0_25, %c0_26] : memref<1x8x8xf32, #tpu.memory_space<vmem>>, vector<1x8x8xf32>
    tpu.vector_store %arg10[%c0_24, %c0_25, %c0_26], %34 {strides = array<i32>} : memref<1x8x8xf32, #tpu.memory_space<vmem>>, vector<1x8x8xf32>,
    return
  }
  func.func @transform_0(%arg0: i32) -> (i32, i32, i32) {
    %c0_i32 = arith.constant 0 : i32
    %c0_i32_0 = arith.constant 0 : i32
    %c0_i32_1 = arith.constant 0 : i32
    return %arg0, %c0_i32, %c0_i32_0 : i32, i32, i32
  }
  func.func @transform_1(%arg0: i32) -> (i32, i32) {
    %c0_i32 = arith.constant 0 : i32
    %c0_i32_0 = arith.constant 0 : i32
    %c0_i32_1 = arith.constant 0 : i32
    return %c0_i32, %c0_i32_0 : i32, i32
  }
  func.func @transform_2(%arg0: i32) -> (i32, i32) {
    %c0_i32 = arith.constant 0 : i32
    %c0_i32_0 = arith.constant 0 : i32
    %c0_i32_1 = arith.constant 0 : i32
    return %c0_i32, %c0_i32_0 : i32, i32
  }
  func.func @transform_3(%arg0: i32) -> (i32, i32) {
    %c0_i32 = arith.constant 0 : i32
    %c0_i32_0 = arith.constant 0 : i32
    %c0_i32_1 = arith.constant 0 : i32
    return %c0_i32, %c0_i32_0 : i32, i32
  }
  func.func @transform_4(%arg0: i32) -> (i32, i32) {
    %c0_i32 = arith.constant 0 : i32
    %c0_i32_0 = arith.constant 0 : i32
    %c0_i32_1 = arith.constant 0 : i32
    return %c0_i32, %c0_i32_0 : i32, i32
  }
  func.func @transform_5(%arg0: i32) -> (i32, i32) {
    %c0_i32 = arith.constant 0 : i32
    %c0_i32_0 = arith.constant 0 : i32
    %c0_i32_1 = arith.constant 0 : i32
    return %c0_i32, %c0_i32_0 : i32, i32
  }
  func.func @transform_6(%arg0: i32) -> (i32, i32) {
    %c0_i32 = arith.constant 0 : i32
    %c0_i32_0 = arith.constant 0 : i32
    %c0_i32_1 = arith.constant 0 : i32
    return %c0_i32, %c0_i32_0 : i32, i32
  }
  func.func @transform_7(%arg0: i32) -> (i32, i32) {
    %c0_i32 = arith.constant 0 : i32
    %c0_i32_0 = arith.constant 0 : i32
    %c0_i32_1 = arith.constant 0 : i32
    return %c0_i32, %c0_i32_0 : i32, i32
  }
  func.func @transform_8(%arg0: i32) -> (i32, i32) {
    %c0_i32 = arith.constant 0 : i32
    %c0_i32_0 = arith.constant 0 : i32
    %c0_i32_1 = arith.constant 0 : i32
    return %c0_i32, %c0_i32_0 : i32, i32
  }
  func.func @transform_9(%arg0: i32) -> (i32, i32, i32) {
    %c0_i32 = arith.constant 0 : i32
    %c0_i32_0 = arith.constant 0 : i32
    %c0_i32_1 = arith.constant 0 : i32
    return %arg0, %c0_i32, %c0_i32_0 : i32, i32, i32
  }
}

module attributes {stable_mosaic.version = 11 : i64} {
  func.func @_head_kernel(%arg0: i32, %arg1: memref<2x64xf32, #tpu.memory_space<vmem>>, %arg2: memref<64x3xbf16, #tpu.memory_space<vmem>>, %arg3: memref<1x3xf32, #tpu.memory_space<vmem>>, %arg4: memref<2x3xf32, #tpu.memory_space<vmem>>) attributes {dimension_semantics = [#tpu.dimension_semantics<arbitrary>], iteration_bounds = array<i64: 1>, scalar_prefetch = 0 : i64, scratch_operands = 0 : i64, tpu.core_type = #tpu.core_type<tc>, window_params = [{pipeline_mode = #tpu.pipeline_mode<synchronous>, transform_indices = @transform_0, window_bounds = array<i64: 2, 64>}, {pipeline_mode = #tpu.pipeline_mode<synchronous>, transform_indices = @transform_1, window_bounds = array<i64: 64, 3>}, {pipeline_mode = #tpu.pipeline_mode<synchronous>, transform_indices = @transform_2, window_bounds = array<i64: 1, 3>}, {pipeline_mode = #tpu.pipeline_mode<synchronous>, transform_indices = @transform_3, window_bounds = array<i64: 2, 3>}]} {
    %c0 = arith.constant 0 : index
    %c0_0 = arith.constant 0 : index
    %0 = vector.load %arg1[%c0, %c0_0] : memref<2x64xf32, #tpu.memory_space<vmem>>, vector<2x64xf32>
    %1 = arith.truncf %0 : vector<2x64xf32> to vector<2x64xbf16>
    %c0_1 = arith.constant 0 : index
    %c0_2 = arith.constant 0 : index
    %2 = vector.load %arg2[%c0_1, %c0_2] : memref<64x3xbf16, #tpu.memory_space<vmem>>, vector<64x3xbf16>
    %cst = arith.constant dense<0.000000e+00> : vector<2x3xf32>
    %3 = tpu.matmul %1, %2, %cst {dimension_numbers = #tpu.dot_dimension_numbers<[1], [0], [0], [1], [0, 0, 1, 1], [], []>} : vector<2x64xbf16>, vector<64x3xbf16>, vector<2x3xf32> -> vector<2x3xf32>
    %c0_3 = arith.constant 0 : index
    %c0_4 = arith.constant 0 : index
    %4 = vector.load %arg3[%c0_3, %c0_4] : memref<1x3xf32, #tpu.memory_space<vmem>>, vector<1x3xf32>
    %5 = vector.broadcast %4 : vector<1x3xf32> to vector<2x3xf32>
    %6 = arith.addf %3, %5 : vector<2x3xf32>
    %c0_5 = arith.constant 0 : index
    %c0_6 = arith.constant 0 : index
    %7 = vector.load %arg4[%c0_5, %c0_6] : memref<2x3xf32, #tpu.memory_space<vmem>>, vector<2x3xf32>
    tpu.vector_store %arg4[%c0_5, %c0_6], %6 {strides = array<i32>} : memref<2x3xf32, #tpu.memory_space<vmem>>, vector<2x3xf32>,
    return
  }
  func.func @transform_0(%arg0: i32) -> (i32, i32) {
    %c0_i32 = arith.constant 0 : i32
    %c0_i32_0 = arith.constant 0 : i32
    %c0_i32_1 = arith.constant 0 : i32
    return %c0_i32, %c0_i32_0 : i32, i32
  }
  func.func @transform_1(%arg0: i32) -> (i32, i32) {
    %c0_i32 = arith.constant 0 : i32
    %c0_i32_0 = arith.constant 0 : i32
    %c0_i32_1 = arith.constant 0 : i32
    return %c0_i32, %c0_i32_0 : i32, i32
  }
  func.func @transform_2(%arg0: i32) -> (i32, i32) {
    %c0_i32 = arith.constant 0 : i32
    %c0_i32_0 = arith.constant 0 : i32
    %c0_i32_1 = arith.constant 0 : i32
    return %c0_i32, %c0_i32_0 : i32, i32
  }
  func.func @transform_3(%arg0: i32) -> (i32, i32) {
    %c0_i32 = arith.constant 0 : i32
    %c0_i32_0 = arith.constant 0 : i32
    %c0_i32_1 = arith.constant 0 : i32
    return %c0_i32, %c0_i32_0 : i32, i32
  }
}

</mosaic_0001>

<bundles_post_ra>
// kernel: transformer_forward.6
= control target key start
LH: loop header
LB: loop body
LE: loop exit
PB: predicated region body
PF: predicated region fallthrough
CT: control target
= control target key end

     0   :  { %s412_s18 = smov 0   ;;  %s441_s0 = inlined_call_operand.vmem [shape: f32[2,8,4], index: 0, kind: input, shape index: {}]   ;;  %s442_s1 = inlined_call_operand.vmem [shape: bf16[4,32], index: 1, kind: input, shape index: {}]   ;;  %s443_s2 = inlined_call_operand.vmem [shape: bf16[4,32], index: 2, kind: input, shape index: {}]   ;;  %s444_s3 = inlined_call_operand.vmem [shape: bf16[4,32], index: 3, kind: input, shape index: {}]   ;;  %s445_s4 = inlined_call_operand.vmem [shape: f32[8,32], index: 4, kind: input, shape index: {}]   ;;  %s446_s5 = inlined_call_operand.vmem [shape: f32[2,8,32], index: 5, kind: output, shape index: {}]  }
   0x1 LB: > { %s354_s19 = sadd.s32 4294967295, %s380_s18   ;;  %p358_p0 = scmp.ge.s32.totalorder %s380_s18, 1  ;;  %s380_s18 = sphi %s412_s18, %s15_s18  }
   0x2   : > { %p186_p1 = scmp.lt.s32.totalorder %s380_s18, 3 }
   0x4   : > { %p187_p2 = pnand %p358_p0, %p186_p1 }
   0x5   : > { %p212_p3 = scmp.lt.s32.totalorder (!%p187_p2), %s354_s19, 1 }
   0x6   : > { %190 = sbr.rel (%p187_p2) target bundleno = 159 (0x9f), region = 40 }
   0xb   : > { %v234_v0 = vld [vmem:[%s443_s2] sm:$0x3]  ;;  %vm239_vm0 = vcmask 1041408   ;;  %s448_s19 = smov (!%p212_p3, %s354_s19), 1  ;;  %vm235_vm1 = vcmask 31744   ;;  %vm299_vm2 = vcmask 261120  }
   0xc   : > { %v232_v1 = vld [vmem:[%s442_s1] sm:$0x3]  ;;  %v241_v2 = vsel %vm239_vm0, %v234_v0, 0  ;;  %s359_s26 = sshll.u32 %s448_s19, 3 }
   0xd   : > { %v260_v3 = vsel %vm239_vm0, %v232_v1, 0  ;;  %v276_v4 = vld [vmem:[%s444_s3] sm:$0x3]  ;;  %250 = vmatpush.bf16.msra.mxu0 %v241_v2  ;;  %s215_s29 = scalar_lea.vmem %s441_s0, %s359_s26  ;;  %s219_s9 = scalar_lea.vmem %s446_s5, %s359_s26 }
   0xe   : > { %269 = vmatpush.bf16.msra.mxu1 %v260_v3  ;;  %v281_v5 = vsel %vm239_vm0, %v276_v4, 0  ;;  %v221_v6 = vld [vmem:[%s215_s29] sm:$0xff] }
   0xf   : > { %290 = vmatpush.bf16.msra.mxu2 %v281_v5  ;;  %v233_v7 = vpack.c.bf16 %v221_v6, %v221_v6  ;;  %v223_v8 = vrot.slane %v221_v6, 7  ;;  %v227_v9 = vrot.slane %v221_v6, 1  ;;  %v297_v17 = vld [vmem:[%s445_s4] sm:$0xff] }
  0x11   : > { %361 = vmatmul.msk.bf16.vlgmr.msra.gmra.mxu0 %vm235_vm1, %v233_v7  ;;  %v231_v10 = vpack.c.bf16 %v223_v8, %v223_v8  ;;  %v275_v11 = vpack.c.bf16 %v227_v9, %v227_v9 }
  0x13   : > { %362 = vmatmul.msk.bf16.vlgmr.msra.gmra.mxu1 %vm235_vm1, %v231_v10  ;;  %363 = vmatmul.msk.bf16.vlgmr.msra.gmra.mxu2 %vm235_vm1, %v275_v11 }
  0x8e   : > { %v252_v12 = vpop.f32.mrf.mxu0 }
  0x90   : > { %v271_v13 = vpop.f32.mrf.mxu1 }
  0x91   : > { %v272_v14 = vadd.f32 %v271_v13, %v252_v12 }
  0x96   : > { %v254_v15 = vpop.f32.mrf.mxu0  ;;  %v292_v16 = vpop.f32.mrf.mxu2 }
  0x97   : > { %v296_v18 = vadd.f32 %v292_v16, %v272_v14 }
  0x98   : > { %v273_v19 = vpop.f32.mrf.mxu1 }
  0x99   : > { %v298_v20 = vadd.f32 %v297_v17, %v296_v18 }
  0x9b   : > { %300 = vst.msk [vmem:[%s219_s9] sm:$0xff] %vm299_vm2, %v298_v20 }
  0x9e   : > { %v294_v21 = vpop.f32.mrf.mxu2 }
  0x9f PF: > { %s15_s18 = sadd.s32 1, %s380_s18  }
  0xa0   : > { %p12_p4 = scmp.ge.s32.totalorder %s15_s18, 4  }
  0xa2   :  { %14 = sbr.rel (!%p12_p4) target bundleno = 1 (0x1), region = 70 }

// kernel: transformer_forward.10
= control target key start
LH: loop header
LB: loop body
LE: loop exit
PB: predicated region body
PF: predicated region fallthrough
CT: control target
= control target key end

     0   :  { %s638_s30 = smov 0   ;;  %s697_s0 = inlined_call_operand.vmem [shape: f32[2,8,16], index: 0, kind: input, shape index: {}]   ;;  %s698_s1 = inlined_call_operand.vmem [shape: bf16[16,16], index: 1, kind: input, shape index: {}]   ;;  %s699_s2 = inlined_call_operand.vmem [shape: bf16[16,16], index: 2, kind: input, shape index: {}]   ;;  %s700_s3 = inlined_call_operand.vmem [shape: bf16[16,16], index: 3, kind: input, shape index: {}]   ;;  %s701_s4 = inlined_call_operand.vmem [shape: f32[1,16], index: 4, kind: input, shape index: {}]   ;;  %s702_s5 = inlined_call_operand.vmem [shape: f32[8,1], index: 5, kind: input, shape index: {}]   ;;  %s703_s6 = inlined_call_operand.vmem [shape: f32[8,1], index: 6, kind: input, shape index: {}]   ;;  %s704_s7 = inlined_call_operand.vmem [shape: f32[16,8], index: 7, kind: input, shape index: {}]   ;;  %s705_s8 = inlined_call_operand.vmem [shape: f32[16,8], index: 8, kind: input, shape index: {}]   ;;  %s706_s9 = inlined_call_operand.vmem [shape: f32[2,8,8], index: 9, kind: output, shape index: {}]  }
   0x1 LB: > { %s539_s10 = sadd.s32 4294967295, %s585_s30   ;;  %p543_p0 = scmp.ge.s32.totalorder %s585_s30, 1  ;;  %s585_s30 = sphi %s638_s30, %s19_s30  }
   0x2   : > { %p286_p1 = scmp.lt.s32.totalorder %s585_s30, 3 }
   0x4   : > { %p287_p2 = pnand %p543_p0, %p286_p1 }
   0x5   : > { %p320_p3 = scmp.lt.s32.totalorder (!%p287_p2), %s539_s10, 1 }
   0x6   : > { %290 = sbr.rel (%p287_p2) target bundleno = 306 (0x132), region = 56 }
   0xb   : > { %v566_v0 = vld [vmem:[%s699_s2] sm:$0xff]  ;;  %s708_s10 = smov (!%p320_p3, %s539_s10), 1  ;;  %v587_v4 = vmov 0   ;;  %vm351_vm0 = vcmask 130048   ;;  %vm333_vm1 = vcmask 1040384   ;;  %vm337_vm2 = vcmask 1046528  }
   0xc   : > { %v565_v1 = vld [vmem:[%s698_s1] sm:$0xff]  ;;  %362 = vmatpush.bf16.msra.mxu0 %v566_v0  ;;  %577 = vset.pattern.permute.xlu0 %v587_v4  ;;  %s544_s19 = sshll.u32 %s708_s10, 3  ;;  %v437_v14 = vld [vmem:[%s704_s7 + $0x8] sm:$0xff]  ;;  %vm484_vm3 = vcmask 64512  }
   0xd   : > { %v567_v2 = vld [vmem:[%s700_s3] sm:$0xff]  ;;  %384 = vmatpush.bf16.msra.mxu1 %v565_v1  ;;  %s323_s22 = scalar_lea.vmem %s697_s0, %s544_s19  ;;  %455 = vmatpush.msra.mxu3 %v437_v14  ;;  %v462_v16 = vld [vmem:[%s705_s8 + $0x8] sm:$0xff]  ;;  %s327_s18 = scalar_lea.vmem %s706_s9, %s544_s19 }
   0xe   : > { %v421_v3 = vld [vmem:[%s702_s5] sm:$0xff]  ;;  %409 = vmatpush.bf16.msra.mxu2 %v567_v2 }
   0xf   : > { %424 = vperm.xlu0 %577, %v421_v3   ;;  %v329_v5 = vld [vmem:[%s323_s22] sm:$0xff] }
  0x10   : > { %v342_v6 = vpack.c.bf16 %v329_v5, %v329_v5  ;;  %v331_v7 = vrot.slane %v329_v5, 7  ;;  %v335_v8 = vrot.slane %v329_v5, 1  ;;  %v428_v13 = vld [vmem:[%s703_s6] sm:$0xff] }
  0x11   : > { %v436_v15 = vld [vmem:[%s704_s7] sm:$0xff] }
  0x12   : > { %550 = vmatmul.msk.bf16.vlgmr.msra.gmra.mxu0 %vm351_vm0, %v342_v6  ;;  %v334_v9 = vsel %vm333_vm1, 0.0, %v331_v7  ;;  %v338_v10 = vsel %vm337_vm2, %v335_v8, 0.0  ;;  %456 = vmatpush.msra.mxu3 %v436_v15  ;;  %v461_v17 = vld [vmem:[%s705_s8] sm:$0xff] }
  0x13   : > { %v339_v11 = vpack.c.bf16 %v334_v9, %v334_v9  ;;  %v390_v12 = vpack.c.bf16 %v338_v10, %v338_v10  ;;  %v578_v23 = vld [vmem:[%s701_s4] ss:$0 sm:$0xff] }
  0x14   : > { %477 = vmatpush.msrb.mxu3 %v462_v16 }
  0x15   : > { %555 = vmatmul.msk.bf16.vlgmr.msra.gmra.mxu1 %vm351_vm0, %v339_v11  ;;  %560 = vmatmul.msk.bf16.vlgmr.msra.gmra.mxu2 %vm351_vm0, %v390_v12 }
  0x16   : > { %478 = vmatpush.msrb.mxu3 %v461_v17 }
  0x17   : > { %431 = vperm.xlu0 %577, %v428_v13  }
  0x81   : > { %v425_v20 = vpop.permute.xlu0 %424 }
  0x89   : > { %v432_v29 = vpop.permute.xlu0 %431 }
  0x8f   : > { %v364_v18 = vpop.f32.mrf.mxu0 }
  0x92   : > { %v386_v19 = vpop.f32.mrf.mxu1 }
  0x93   : > { %v387_v21 = vadd.f32 %v386_v19, %v364_v18 }
  0x97   : > { %v366_v22 = vpop.f32.mrf.mxu0 }
  0x98   : > { %v411_v24 = vpop.f32.mrf.mxu2 }
  0x99   : > { %v415_v25 = vadd.f32 %v411_v24, %v387_v21 }
  0x9a   : > { %v388_v26 = vpop.f32.mrf.mxu1 }
  0x9b   : > { %v420_v27 = vadd.f32 %v578_v23, %v415_v25 }
  0x9d   : > { %v427_v28 = vmul.f32 %v425_v20, %v420_v27 }
  0x9f   : > { %v434_v30 = vadd.f32 %v432_v29, %v427_v28 }
  0xa0   : > { %v413_v31 = vpop.f32.mrf.mxu2 }
  0xa1   : > { %v435_v32 = vmax.f32 %v434_v30, 0.0 }
  0xa3   : > { %561 = vmatmul.msk.f32.vlgmr.msra.gmra.mxu3 %vm351_vm0, %v435_v32 }
  0xab   : > { %562 = vmatmul.msk.f32.vlgmr.msrb.gmra.mxu3 %vm351_vm0, %v435_v32 }
 0x126   : > { %v458_v33 = vpop.f32.mrf.mxu3 }
 0x12e   : > { %v480_v34 = vpop.f32.mrf.mxu3 }
 0x12f   : > { %v483_v35 = vmax.f32 %v458_v33, %v480_v34 }
 0x131   : > { %485 = vst.msk [vmem:[%s327_s18] sm:$0xff] %vm484_vm3, %v483_v35 }
 0x132 PF: > { %s19_s30 = sadd.s32 1, %s585_s30  }
 0x133   : > { %p16_p4 = scmp.ge.s32.totalorder %s19_s30, 4  }
 0x135   :  { %18 = sbr.rel (!%p16_p4) target bundleno = 1 (0x1), region = 86 }

// kernel: transformer_forward.9
= control target key start
LH: loop header
LB: loop body
LE: loop exit
PB: predicated region body
PF: predicated region fallthrough
CT: control target
= control target key end

     0   :  { %s681_s30 = smov 0   ;;  %s761_s0 = inlined_call_operand.vmem [shape: f32[2,8,32], index: 0, kind: input, shape index: {}]   ;;  %s762_s1 = inlined_call_operand.vmem [shape: bf16[32,32], index: 1, kind: input, shape index: {}]   ;;  %s763_s2 = inlined_call_operand.vmem [shape: bf16[32,32], index: 2, kind: input, shape index: {}]   ;;  %s764_s3 = inlined_call_operand.vmem [shape: bf16[32,32], index: 3, kind: input, shape index: {}]   ;;  %s765_s4 = inlined_call_operand.vmem [shape: f32[1,32], index: 4, kind: input, shape index: {}]   ;;  %s766_s5 = inlined_call_operand.vmem [shape: f32[8,1], index: 5, kind: input, shape index: {}]   ;;  %s767_s6 = inlined_call_operand.vmem [shape: f32[8,1], index: 6, kind: input, shape index: {}]   ;;  %s768_s7 = inlined_call_operand.vmem [shape: f32[32,16], index: 7, kind: input, shape index: {}]   ;;  %s769_s8 = inlined_call_operand.vmem [shape: f32[32,16], index: 8, kind: input, shape index: {}]   ;;  %s770_s9 = inlined_call_operand.vmem [shape: f32[2,8,16], index: 9, kind: output, shape index: {}]  }
   0x1 LB: > { %s567_s10 = sadd.s32 4294967295, %s628_s30   ;;  %p571_p0 = scmp.ge.s32.totalorder %s628_s30, 1  ;;  %s628_s30 = sphi %s681_s30, %s19_s30  }
   0x2   : > { %p286_p1 = scmp.lt.s32.totalorder %s628_s30, 3 }
   0x4   : > { %p287_p2 = pnand %p571_p0, %p286_p1 }
   0x5   : > { %p320_p3 = scmp.lt.s32.totalorder (!%p287_p2), %s567_s10, 1 }
   0x6   : > { %290 = sbr.rel (%p287_p2) target bundleno = 306 (0x132), region = 56 }
   0xb   : > { %v608_v0 = vld [vmem:[%s763_s2 + $0x8] sm:$0xff]  ;;  %v607_v3 = vld [vmem:[%s763_s2] sm:$0xff]  ;;  %s772_s10 = smov (!%p320_p3, %s567_s10), 1  ;;  %v630_v7 = vmov 0   ;;  %vm361_vm0 = vcmask 261120   ;;  %vm333_vm1 = vcmask 1040384  }
   0xc   : > { %v606_v1 = vld [vmem:[%s762_s1 + $0x8] sm:$0xff]  ;;  %371 = vmatpush.bf16.msra.mxu0 %v608_v0  ;;  %v605_v4 = vld [vmem:[%s762_s1] sm:$0xff]  ;;  %620 = vset.pattern.permute.xlu0 %v630_v7  ;;  %s572_s25 = sshll.u32 %s772_s10, 3  ;;  %vm337_vm2 = vcmask 1046528   ;;  %v463_v17 = vld [vmem:[%s768_s7 + $0x18] sm:$0xff]  ;;  %vm512_vm3 = vcmask 130048  }
   0xd   : > { %v610_v2 = vld [vmem:[%s764_s3 + $0x8] sm:$0xff]  ;;  %399 = vmatpush.bf16.msra.mxu1 %v606_v1  ;;  %v445_v5 = vld [vmem:[%s766_s5] sm:$0xff]  ;;  %s323_s28 = scalar_lea.vmem %s761_s0, %s572_s25  ;;  %479 = vmatpush.msra.mxu3 %v463_v17  ;;  %v462_v18 = vld [vmem:[%s768_s7 + $0x10] sm:$0xff]  ;;  %s327_s14 = scalar_lea.vmem %s770_s9, %s572_s25 }
   0xe   : > { %432 = vmatpush.bf16.msra.mxu2 %v610_v2  ;;  %v609_v6 = vld [vmem:[%s764_s3] sm:$0xff]  ;;  %448 = vperm.xlu0 %620, %v445_v5   ;;  %v461_v19 = vld [vmem:[%s768_s7 + $0x8] sm:$0xff]  ;;  %v490_v21 = vld [vmem:[%s769_s8 + $0x18] sm:$0xff] }
   0xf   : > { %v329_v8 = vld [vmem:[%s323_s28] sm:$0xff]  ;;  %480 = vmatpush.msra.mxu3 %v462_v18  ;;  %v489_v22 = vld [vmem:[%s769_s8 + $0x10] sm:$0xff]  ;;  %v488_v23 = vld [vmem:[%s769_s8 + $0x8] sm:$0xff] }
  0x10   : > { %372 = vmatpush.bf16.msra.mxu0 %v607_v3  ;;  %v344_v9 = vpack.c.bf16 %v329_v8, %v329_v8  ;;  %v331_v10 = vrot.slane %v329_v8, 7  ;;  %v335_v11 = vrot.slane %v329_v8, 1  ;;  %v452_v16 = vld [vmem:[%s767_s6] sm:$0xff] }
  0x11   : > { %400 = vmatpush.bf16.msra.mxu1 %v605_v4  ;;  %481 = vmatpush.msra.mxu3 %v461_v19  ;;  %v460_v20 = vld [vmem:[%s768_s7] sm:$0xff] }
  0x12   : > { %433 = vmatpush.bf16.msra.mxu2 %v609_v6  ;;  %v334_v12 = vsel %vm333_vm1, 0.0, %v331_v10  ;;  %v338_v13 = vsel %vm337_vm2, %v335_v11, 0.0  ;;  %v487_v24 = vld [vmem:[%s769_s8] sm:$0xff] }
  0x13   : > { %582 = vmatmul.msk.bf16.vlgmr.msra.gmra.mxu0 %vm361_vm0, %v344_v9  ;;  %v339_v14 = vpack.c.bf16 %v334_v12, %v334_v12  ;;  %v406_v15 = vpack.c.bf16 %v338_v13, %v338_v13  ;;  %482 = vmatpush.msra.mxu3 %v460_v20  ;;  %v621_v30 = vld [vmem:[%s765_s4] ss:$0 sm:$0xff] }
  0x15   : > { %591 = vmatmul.msk.bf16.vlgmr.msra.gmra.mxu1 %vm361_vm0, %v339_v14  ;;  %600 = vmatmul.msk.bf16.vlgmr.msra.gmra.mxu2 %vm361_vm0, %v406_v15 }
  0x16   : > { %455 = vperm.xlu0 %620, %v452_v16   ;;  %503 = vmatpush.msrb.mxu3 %v490_v21 }
  0x18   : > { %504 = vmatpush.msrb.mxu3 %v489_v22 }
  0x1a   : > { %505 = vmatpush.msrb.mxu3 %v488_v23 }
  0x1c   : > { %506 = vmatpush.msrb.mxu3 %v487_v24 }
  0x80   : > { %v449_v27 = vpop.permute.xlu0 %448 }
  0x88   : > { %v456_v36 = vpop.permute.xlu0 %455 }
  0x90   : > { %v374_v25 = vpop.f32.mrf.mxu0 }
  0x92   : > { %v402_v26 = vpop.f32.mrf.mxu1 }
  0x93   : > { %v403_v28 = vadd.f32 %v402_v26, %v374_v25 }
  0x98   : > { %v376_v29 = vpop.f32.mrf.mxu0  ;;  %v435_v31 = vpop.f32.mrf.mxu2 }
  0x99   : > { %v439_v32 = vadd.f32 %v435_v31, %v403_v28 }
  0x9a   : > { %v404_v33 = vpop.f32.mrf.mxu1 }
  0x9b   : > { %v444_v34 = vadd.f32 %v621_v30, %v439_v32 }
  0x9d   : > { %v451_v35 = vmul.f32 %v449_v27, %v444_v34 }
  0x9f   : > { %v458_v37 = vadd.f32 %v456_v36, %v451_v35 }
  0xa0   : > { %v437_v38 = vpop.f32.mrf.mxu2 }
  0xa1   : > { %v459_v39 = vmax.f32 %v458_v37, 0.0 }
  0xa3   : > { %601 = vmatmul.msk.f32.vlgmr.msra.gmra.mxu3 %vm361_vm0, %v459_v39 }
  0xab   : > { %602 = vmatmul.msk.f32.vlgmr.msrb.gmra.mxu3 %vm361_vm0, %v459_v39 }
 0x126   : > { %v484_v40 = vpop.f32.mrf.mxu3 }
 0x12e   : > { %v508_v41 = vpop.f32.mrf.mxu3 }
 0x12f   : > { %v511_v42 = vmax.f32 %v484_v40, %v508_v41 }
 0x131   : > { %513 = vst.msk [vmem:[%s327_s14] sm:$0xff] %vm512_vm3, %v511_v42 }
 0x132 PF: > { %s19_s30 = sadd.s32 1, %s628_s30  }
 0x133   : > { %p16_p4 = scmp.ge.s32.totalorder %s19_s30, 4  }
 0x135   :  { %18 = sbr.rel (!%p16_p4) target bundleno = 1 (0x1), region = 86 }

// kernel: transformer_forward.7
= control target key start
LH: loop header
LB: loop body
LE: loop exit
PB: predicated region body
PF: predicated region fallthrough
CT: control target
= control target key end

     0   :  { %s2295_s25 = smov 0   ;;  %s2655_s0 = inlined_call_operand.vmem [shape: f32[8,2,32], index: 0, kind: input, shape index: {}]   ;;  %s2656_s1 = inlined_call_operand.vmem [shape: bf16[32,96], index: 1, kind: input, shape index: {}]   ;;  %s2657_s2 = inlined_call_operand.vmem [shape: f32[1,96], index: 2, kind: input, shape index: {}]   ;;  %s2658_s3 = inlined_call_operand.vmem [shape: bf16[32,32], index: 3, kind: input, shape index: {}]   ;;  %s2659_s4 = inlined_call_operand.vmem [shape: f32[1,32], index: 4, kind: input, shape index: {}]   ;;  %s2660_s5 = inlined_call_operand.vmem [shape: f32[1,32], index: 5, kind: input, shape index: {}]   ;;  %s2661_s6 = inlined_call_operand.vmem [shape: f32[1,32], index: 6, kind: input, shape index: {}]   ;;  %s2662_s7 = inlined_call_operand.vmem [shape: bf16[32,64], index: 7, kind: input, shape index: {}]   ;;  %s2663_s8 = inlined_call_operand.vmem [shape: f32[1,64], index: 8, kind: input, shape index: {}]   ;;  %s2664_s9 = inlined_call_operand.vmem [shape: bf16[64,32], index: 9, kind: input, shape index: {}]   ;;  %s2665_s10 = inlined_call_operand.vmem [shape: f32[1,32], index: 10, kind: input, shape index: {}]   ;;  %s2666_s11 = inlined_call_operand.vmem [shape: f32[1,32], index: 11, kind: input, shape index: {}]   ;;  %s2667_s12 = inlined_call_operand.vmem [shape: f32[1,32], index: 12, kind: input, shape index: {}]   ;;  %s2668_s13 = inlined_call_operand.vmem [shape: f32[8,2,32], index: 13, kind: output, shape index: {}]  }
   0x1 LB: > { %s1996_s26 = sadd.s32 4294967295, %s2204_s25   ;;  %p2000_p0 = scmp.ge.s32.totalorder %s2204_s25, 1  ;;  %s2204_s25 = sphi %s2295_s25, %s23_s25  }
   0x2   : > { %p388_p1 = scmp.lt.s32.totalorder %s2204_s25, 3 }
   0x4   : > { %p389_p2 = pnand %p2000_p0, %p388_p1 }
   0x5   : > { %s2001_s29 = sshll.u32 (!%p389_p2), %s1996_s26, 2  ;;  %s2206_s21 = smov (!%p389_p2), 96  }
   0x6   : > { %392 = sbr.rel (%p389_p2) target bundleno = 3191 (0xc77), region = 72  ;;  %p433_p3 = scmp.lt.s32.totalorder (!%p389_p2), %s2001_s29, 7 }
   0x7   : > { %s2207_s22 = smov (!%p389_p2), 64   ;;  %s2208_s23 = smov (!%p389_p2), 88  }
   0x8   : > { %s2209_s24 = smov (!%p389_p2), 120   ;;  %s2210_s26 = smov (!%p389_p2), 56  }
   0x9   : > { %s2211_s27 = smov (!%p389_p2), 80   ;;  %s2212_s28 = smov (!%p389_p2), 112  }
   0xa   : > { %s2213_s30 = smov (!%p389_p2), 48   ;;  %s2214_s14 = smov (!%p389_p2), 72  }
   0xb   : > { %v2084_v0 = vld [vmem:[%s2656_s1 + $0x8] sm:$0xff]  ;;  %v2083_v1 = vld [vmem:[%s2656_s1] sm:$0xff]  ;;  %s2670_s29 = smov (!%p433_p3, %s2001_s29), 7  ;;  %vm483_vm0 = vcmask 261120   ;;  %vm516_vm1 = vcmask 64512   ;;  %vm663_vm2 = vcmask 1040384  }
   0xc   : > { %493 = vmatpush.bf16.msra.mxu0 %v2084_v0  ;;  %s2002_s15 = sshll.u32 %s2670_s29, 1  ;;  %v2120_v8 = vld [vmem:[%s2657_s2] ss:$0 sm:$0xff]  ;;  %vm608_vm3 = vcmask 9216   ;;  %vm659_vm4 = vcmask 15360   ;;  %s2215_s16 = smov 104  }
   0xd   : > { %s436_s18 = scalar_lea.vmem %s2655_s0, %s2002_s15  ;;  %s2216_s17 = smov 40   ;;  %vm1472_vm5 = vcmask 195584   ;;  %vm1467_vm6 = vcmask 130048   ;;  %vm1766_vm11 = vcmask 523264   ;;  %vm1935_vm15 = vcmask 254976  }
   0xe   : > { %v2317_v2 = vld [vmem:[%s436_s18] sm:$0x3]  ;;  %v2319_v3 = vld [vmem:[%s436_s18 + $0x2] sm:$0x3]  ;;  %v2321_v4 = vld [vmem:[%s436_s18 + $0x4] sm:$0x3] }
   0xf   : > { %v2323_v5 = vld [vmem:[%s436_s18 + $0x6] sm:$0x3]  ;;  %453 = vst [vmem:[#allocation1] ss:$4 sm:$0xff] %v2317_v2  ;;  %s2217_s18 = smov 8   ;;  %s2218_s19 = smov 16  }
  0x10   : > { %494 = vmatpush.bf16.msra.mxu0 %v2083_v1  ;;  %455 = vst [vmem:[#allocation1 + $0x1] ss:$4 sm:$0xff] %v2319_v3  ;;  %s2219_s20 = smov 24  }
  0x11   : > { %457 = vst [vmem:[#allocation1 + $0x2] ss:$4 sm:$0xff] %v2321_v4 }
  0x12   : > { %459 = vst [vmem:[#allocation1 + $0x3] ss:$4 sm:$0xff] %v2323_v5 }
  0x19   : > { %v460_v6 = vld.sshfl [vmem:[#allocation1] sm:$0xff pattern:$0x73625140] }
  0x1a   : > { %v462_v7 = vpack.c.bf16 %v460_v6, %v460_v6 }
  0x1c   : > { %2013 = vmatmul.msk.bf16.vlgmr.msra.gmra.mxu0 %vm483_vm0, %v462_v7 }
  0x99   : > { %v496_v9 = vpop.f32.mrf.mxu0 }
  0x9a   : > { %v497_v10 = vadd.f32 %v2120_v8, %v496_v9 }
  0x9c   : > { %v501_v11 = vrot.slane %v497_v10, 2  ;;  %v503_v12 = vrot.slane %v497_v10, 6  ;;  %v507_v13 = vpack.c.bf16 %v497_v10, %v497_v10  ;;  %v502_v14 = vrot.slane %v497_v10, 4 }
  0x9e   : > { %v508_v15 = vpack.c.bf16 %v501_v11, %v501_v11  ;;  %v512_v16 = vunpack.c.l.b16 %v507_v13  ;;  %v510_v17 = vpack.c.bf16 %v503_v12, %v503_v12  ;;  %v509_v21 = vpack.c.bf16 %v502_v14, %v502_v14 }
  0xa0   : > { %v2333_v18 = vpack.c.b16 %v512_v16, %v512_v16  ;;  %v537_v19 = vunpack.c.l.b16 %v508_v15  ;;  %v585_v23 = vunpack.c.l.b16 %v510_v17  ;;  %v561_v24 = vunpack.c.l.b16 %v509_v21 }
  0xa1   : > { %v498_v20 = vpop.f32.mrf.mxu0 }
  0xa2   : > { %v2335_v22 = vpack.c.b16 %v537_v19, %v537_v19  ;;  %514 = vrot.lane.b32.xlu1 %v2333_v18, %s2206_s21  ;;  %v2341_v25 = vpack.c.b16 %v585_v23, %v585_v23  ;;  %v2343_v26 = vpack.c.b16 %v561_v24, %v561_v24 }
  0xa4   : > { %680 = vrot.lane.b32.xlu2 %v2335_v22, %s2207_s22  ;;  %539 = vrot.lane.b32.xlu0 %v2335_v22, %s2206_s21 }
  0xaa   : > { %587 = vrot.lane.b32.xlu1 %v2341_v25, %s2206_s21 }
  0xac   : > { %563 = vrot.lane.b32.xlu0 %v2343_v26, %s2206_s21 }
  0xfe   : > { %v681_v28 = vpop.permute.xlu2 %680 }
  0xff   : > { %v686_v32 = vsel %vm663_vm2, %v681_v28, 0 }
 0x114   : > { %v515_v27 = vpop.permute.xlu1 %514 }
 0x115   : > { %v521_v29 = vsel %vm516_vm1, %v515_v27, 0 }
 0x116   : > { %530 = vmatpush.bf16.xpose.msra.mxu1 %v521_v29  ;;  %v540_v30 = vpop.permute.xlu0 %539 }
 0x117   : > { %v545_v31 = vsel %vm516_vm1, %v540_v30, 0 }
 0x118   : > { %554 = vmatpush.bf16.xpose.msra.mxu2 %v545_v31 }
 0x11c   : > { %v588_v33 = vpop.permute.xlu1 %587 }
 0x11d   : > { %2014 = vmatmul.msk.bf16.vlgmr.msra.gmra.mxu1 %vm516_vm1, %v507_v13  ;;  %v593_v34 = vsel %vm516_vm1, %v588_v33, 0 }
 0x11e   : > { %602 = vmatpush.bf16.xpose.msrb.mxu0 %v593_v34  ;;  %v564_v35 = vpop.permute.xlu0 %563 }
 0x11f   : > { %2015 = vmatmul.msk.bf16.vlgmr.msra.gmra.mxu2 %vm516_vm1, %v508_v15  ;;  %v569_v36 = vsel %vm516_vm1, %v564_v35, 0 }
 0x120   : > { %695 = vmatpush.bf16.msrb.mxu2 %v686_v32  ;;  %578 = vmatpush.bf16.xpose.msra.mxu3 %v569_v36 }
 0x125   : > { %2017 = vmatmul.msk.bf16.vlgmr.msrb.gmra.mxu0 %vm516_vm1, %v510_v17 }
 0x127   : > { %2016 = vmatmul.msk.bf16.vlgmr.msra.gmra.mxu3 %vm516_vm1, %v509_v21 }
 0x19a   : > { %v532_v37 = vpop.f32.mrf.mxu1 }
 0x19b   : > { %v609_v38 = vsel %vm608_vm3, %v532_v37, -inf }
 0x19c   : > { %610 = vmax.xlane.f32.xlu0 %v609_v38 }
 0x1a2   : > { %v534_v39 = vpop.f32.mrf.mxu1  ;;  %v556_v40 = vpop.f32.mrf.mxu2 }
 0x1a3   : > { %v604_v41 = vpop.f32.mrf.mxu0  ;;  %v612_v42 = vsel %vm608_vm3, %v556_v40, -inf }
 0x1a4   : > { %v618_v43 = vsel %vm608_vm3, %v604_v41, -inf  ;;  %613 = vmax.xlane.f32.xlu2 %v612_v42 }
 0x1a5   : > { %619 = vmax.xlane.f32.xlu1 %v618_v43 }
 0x1aa   : > { %v558_v44 = vpop.f32.mrf.mxu2  ;;  %v580_v45 = vpop.f32.mrf.mxu3 }
 0x1ab   : > { %v606_v46 = vpop.f32.mrf.mxu0  ;;  %v615_v47 = vsel %vm608_vm3, %v580_v45, -inf }
 0x1ac   : > { %616 = vmax.xlane.f32.xlu2 %v615_v47 }
 0x1b0   : > { %768 = vrot.lane.b32.xlu0 %v2335_v22, %s2208_s23 }
 0x1b2   : > { %v582_v48 = vpop.f32.mrf.mxu3 }
 0x1be   : > { %791 = vrot.lane.b32.xlu1 %v2343_v26, %s2208_s23 }
 0x1c4   : > { %701 = vrot.lane.b32.xlu2 %v2343_v26, %s2207_s22 }
 0x1c6   : > { %766 = vrot.lane.b32.xlu1 %v2335_v22, %s2209_s24 }
 0x1ce   : > { %789 = vrot.lane.b32.xlu1 %v2343_v26, %s2209_s24 }
 0x1d6   : > { %657 = vrot.lane.b32.xlu1 %v2333_v18, %s2207_s22 }
 0x1de   : > { %745 = vrot.lane.b32.xlu1 %v2333_v18, %s2208_s23 }
 0x1e6   : > { %814 = vrot.lane.b32.xlu1 %v2341_v25, %s2208_s23 }
 0x1ee   : > { %812 = vrot.lane.b32.xlu1 %v2341_v25, %s2209_s24 }
 0x20f   : > { %v611_v49 = vpop.xlane.xlu0 %610 }
 0x210   : > { %v621_v50 = vsub.f32 %v532_v37, %v611_v49 }
 0x212   : > { %v625_v51 = vmul.f32 1.442695, %v621_v50 }
 0x214   : > { %2128 = vpow2.f32 %v625_v51 }
 0x217   : > { %v614_v52 = vpop.xlane.xlu2 %613 }
 0x218   : > { %v620_v53 = vpop.xlane.xlu1 %619  ;;  %v622_v54 = vsub.f32 %v556_v40, %v614_v52 }
 0x219   : > { %v624_v55 = vsub.f32 %v604_v41, %v620_v53 }
 0x21a   : > { %v2129_v56 = vpop.eup %2128  ;;  %v627_v57 = vmul.f32 1.442695, %v622_v54 }
 0x21b   : > { %v631_v58 = vmul.f32 1.442695, %v624_v55  ;;  %v633_v59 = vsel %vm608_vm3, %v2129_v56, 0.0 }
 0x21c   : > { %2130 = vpow2.f32 %v627_v57  ;;  %634 = vadd.xlane.f32.xlu2 %v633_v59 }
 0x21d   : > { %2132 = vpow2.f32 %v631_v58 }
 0x21f   : > { %v617_v60 = vpop.xlane.xlu2 %616 }
 0x220   : > { %v623_v61 = vsub.f32 %v580_v45, %v617_v60 }
 0x222   : > { %v2131_v62 = vpop.eup %2130  ;;  %v629_v63 = vmul.f32 1.442695, %v623_v61  ;;  %v769_v0 = vpop.permute.xlu0 %768 }
 0x223   : > { %v2133_v1 = vpop.eup %2132  ;;  %v774_v6 = vsel %vm516_vm1, %v769_v0, 0  ;;  %v636_v7 = vsel %vm608_vm3, %v2131_v62, 0.0 }
 0x224   : > { %2134 = vpow2.f32 %v629_v63  ;;  %v642_v8 = vsel %vm608_vm3, %v2133_v1, 0.0  ;;  %637 = vadd.xlane.f32.xlu2 %v636_v7  ;;  %783 = vmatpush.bf16.xpose.msra.mxu2 %v774_v6 }
 0x225   : > { %643 = vadd.xlane.f32.xlu0 %v642_v8 }
 0x227   : > { %v702_v9 = vpop.permute.xlu2 %701 }
 0x228   : > { %v707_v10 = vsel %vm663_vm2, %v702_v9, 0 }
 0x229   : > { %716 = vmatpush.bf16.msrb.mxu3 %v707_v10 }
 0x22a   : > { %v2135_v11 = vpop.eup %2134 }
 0x22b   : > { %v639_v12 = vsel %vm608_vm3, %v2135_v11, 0.0 }
 0x22c   : > { %640 = vadd.xlane.f32.xlu2 %v639_v12 }
 0x230   : > { %v792_v13 = vpop.permute.xlu1 %791 }
 0x231   : > { %v797_v14 = vsel %vm516_vm1, %v792_v13, 0 }
 0x232   : > { %806 = vmatpush.bf16.xpose.msra.mxu3 %v797_v14 }
 0x238   : > { %v767_v15 = vpop.permute.xlu1 %766 }
 0x239   : > { %743 = vrot.lane.b32.xlu0 %v2333_v18, %s2209_s24 }
 0x240   : > { %v790_v16 = vpop.permute.xlu1 %789 }
 0x244   : > { %722 = vrot.lane.b32.xlu2 %v2341_v25, %s2207_s22 }
 0x248   : > { %v658_v17 = vpop.permute.xlu1 %657 }
 0x249   : > { %v665_v19 = vsel %vm663_vm2, %v658_v17, 0 }
 0x24a   : > { %674 = vmatpush.bf16.msrb.mxu1 %v665_v19 }
 0x250   : > { %v746_v20 = vpop.permute.xlu1 %745 }
 0x251   : > { %v751_v21 = vsel %vm516_vm1, %v746_v20, 0 }
 0x252   : > { %760 = vmatpush.bf16.xpose.msra.mxu1 %v751_v21 }
 0x258   : > { %v815_v37 = vpop.permute.xlu1 %814 }
 0x259   : > { %v820_v42 = vsel %vm516_vm1, %v815_v37, 0 }
 0x260   : > { %v813_v46 = vpop.permute.xlu1 %812 }
 0x28f   : > { %v635_v23 = vpop.xlane.xlu2 %634 }
 0x290   : > { %2136 = vrcp.f32 %v635_v23 }
 0x296   : > { %v2137_v24 = vpop.eup %2136 }
 0x297   : > { %v649_v27 = vmul.f32 %v2137_v24, %v2129_v56  ;;  %v638_v28 = vpop.xlane.xlu2 %637 }
 0x298   : > { %2138 = vrcp.f32 %v638_v28  ;;  %v644_v30 = vpop.xlane.xlu0 %643 }
 0x299   : > { %v653_v29 = vpack.c.bf16 %v649_v27, %v649_v27  ;;  %2140 = vrcp.f32 %v644_v30 }
 0x29b   : > { %2018 = vmatmul.msk.bf16.vlgmr.msrb.gmra.mxu1 %vm659_vm4, %v653_v29 }
 0x29e   : > { %v2139_v31 = vpop.eup %2138 }
 0x29f   : > { %v650_v32 = vmul.f32 %v2139_v31, %v2131_v62  ;;  %v641_v33 = vpop.xlane.xlu2 %640  ;;  %v2141_v35 = vpop.eup %2140 }
 0x2a0   : > { %2142 = vrcp.f32 %v641_v33  ;;  %v652_v38 = vmul.f32 %v2141_v35, %v2133_v1 }
 0x2a1   : > { %v654_v34 = vpack.c.bf16 %v650_v32, %v650_v32 }
 0x2a2   : > { %v656_v44 = vpack.c.bf16 %v652_v38, %v652_v38 }
 0x2a3   : > { %2019 = vmatmul.msk.bf16.vlgmr.msrb.gmra.mxu2 %vm659_vm4, %v654_v34 }
 0x2a6   : > { %v2143_v36 = vpop.eup %2142 }
 0x2a7   : > { %v651_v39 = vmul.f32 %v2143_v36, %v2135_v11  ;;  %v723_v40 = vpop.permute.xlu2 %722 }
 0x2a8   : > { %v728_v41 = vsel %vm663_vm2, %v723_v40, 0 }
 0x2a9   : > { %737 = vmatpush.bf16.msra.mxu0 %v728_v41  ;;  %v655_v43 = vpack.c.bf16 %v651_v39, %v651_v39 }
 0x2ab   : > { %v744_v45 = vpop.permute.xlu0 %743  ;;  %2020 = vmatmul.msk.bf16.vlgmr.msrb.gmra.mxu3 %vm659_vm4, %v655_v43 }
 0x2ac   : > { %2022 = vmatmul.msk.bf16.vlgmr.msra.gmra.mxu1 %vm516_vm1, %v744_v45  ;;  %2021 = vmatmul.msk.bf16.vlgmr.msra.gmra.mxu0 %vm659_vm4, %v656_v44 }
 0x2ad   : > { %829 = vmatpush.bf16.xpose.msrb.mxu0 %v820_v42 }
 0x2b3   : > { %2023 = vmatmul.msk.bf16.vlgmr.msra.gmra.mxu2 %vm516_vm1, %v767_v15 }
 0x2bb   : > { %2024 = vmatmul.msk.bf16.vlgmr.msra.gmra.mxu3 %vm516_vm1, %v790_v16 }
 0x2bc   : > { %2025 = vmatmul.msk.bf16.vlgmr.msrb.gmra.mxu0 %vm516_vm1, %v813_v46 }
 0x318   : > { %v2397_v47 = vpop.f32.mrf.mxu1 }
 0x320   : > { %v678_v48 = vpop.f32.mrf.mxu1 }
 0x326   : > { %v2399_v49 = vpop.f32.mrf.mxu2 }
 0x329   : > { %v762_v50 = vpop.f32.mrf.mxu1  ;;  %v2401_v51 = vpop.f32.mrf.mxu0 }
 0x32a   : > { %v835_v52 = vsel %vm608_vm3, %v762_v50, -inf }
 0x32b   : > { %836 = vmax.xlane.f32.xlu0 %v835_v52 }
 0x32e   : > { %v699_v53 = vpop.f32.mrf.mxu2  ;;  %v2404_v54 = vpop.f32.mrf.mxu3 }
 0x331   : > { %v764_v55 = vpop.f32.mrf.mxu1  ;;  %v741_v56 = vpop.f32.mrf.mxu0 }
 0x336   : > { %v720_v57 = vpop.f32.mrf.mxu3  ;;  %v785_v58 = vpop.f32.mrf.mxu2 }
 0x337   : > { %v838_v59 = vsel %vm608_vm3, %v785_v58, -inf }
 0x338   : > { %839 = vmax.xlane.f32.xlu2 %v838_v59 }
 0x339   : > { %v831_v60 = vpop.f32.mrf.mxu0 }
 0x33a   : > { %v844_v0 = vsel %vm608_vm3, %v831_v60, -inf }
 0x33e   : > { %v787_v61 = vpop.f32.mrf.mxu2  ;;  %v808_v62 = vpop.f32.mrf.mxu3 }
 0x33f   : > { %925 = vrot.lane.b32.xlu0 %v2343_v26, %s2210_s26  ;;  %v841_v63 = vsel %vm608_vm3, %v808_v62, -inf }
 0x340   : > { %842 = vmax.xlane.f32.xlu1 %v841_v63  ;;  %845 = vmax.xlane.f32.xlu2 %v844_v0 }
 0x341   : > { %v833_v1 = vpop.f32.mrf.mxu0 }
 0x346   : > { %v810_v6 = vpop.f32.mrf.mxu3 }
 0x347   : > { %992 = vrot.lane.b32.xlu0 %v2335_v22, %s2211_s27 }
 0x34f   : > { %946 = vrot.lane.b32.xlu0 %v2341_v25, %s2210_s26 }
 0x357   : > { %1013 = vrot.lane.b32.xlu0 %v2343_v26, %s2212_s28 }
 0x359   : > { %904 = vrot.lane.b32.xlu1 %v2335_v22, %s2210_s26 }
 0x35f   : > { %1038 = vrot.lane.b32.xlu0 %v2341_v25, %s2211_s27 }
 0x39e   : > { %v837_v7 = vpop.xlane.xlu0 %836 }
 0x39f   : > { %v847_v8 = vsub.f32 %v762_v50, %v837_v7 }
 0x3a1   : > { %v851_v9 = vmul.f32 1.442695, %v847_v8 }
 0x3a3   : > { %2144 = vpow2.f32 %v851_v9 }
 0x3a9   : > { %v2421_v10 = vpop.eup %2144 }
 0x3aa   : > { %v859_v11 = vsel %vm608_vm3, %v2421_v10, 0.0 }
 0x3ab   : > { %860 = vadd.xlane.f32.xlu2 %v859_v11  ;;  %v840_v12 = vpop.xlane.xlu2 %839 }
 0x3ac   : > { %v848_v13 = vsub.f32 %v785_v58, %v840_v12 }
 0x3ae   : > { %v853_v14 = vmul.f32 1.442695, %v848_v13 }
 0x3b0   : > { %2146 = vpow2.f32 %v853_v14 }
 0x3b1   : > { %v926_v15 = vpop.permute.xlu0 %925 }
 0x3b2   : > { %v931_v16 = vsel %vm663_vm2, %v926_v15, 0 }
 0x3b3   : > { %940 = vmatpush.bf16.msrb.mxu3 %v931_v16  ;;  %v846_v17 = vpop.xlane.xlu2 %845  ;;  %v843_v19 = vpop.xlane.xlu1 %842 }
 0x3b4   : > { %v850_v20 = vsub.f32 %v831_v60, %v846_v17  ;;  %v849_v24 = vsub.f32 %v808_v62, %v843_v19 }
 0x3b6   : > { %v2147_v21 = vpop.eup %2146  ;;  %v857_v23 = vmul.f32 1.442695, %v850_v20  ;;  %v855_v29 = vmul.f32 1.442695, %v849_v24 }
 0x3b7   : > { %v862_v27 = vsel %vm608_vm3, %v2147_v21, 0.0 }
 0x3b8   : > { %863 = vadd.xlane.f32.xlu1 %v862_v27  ;;  %2148 = vpow2.f32 %v857_v23 }
 0x3b9   : > { %v993_v28 = vpop.permute.xlu0 %992  ;;  %2150 = vpow2.f32 %v855_v29 }
 0x3ba   : > { %v998_v39 = vsel %vm516_vm1, %v993_v28, 0 }
 0x3be   : > { %v2149_v30 = vpop.eup %2148 }
 0x3bf   : > { %v868_v31 = vsel %vm608_vm3, %v2149_v30, 0.0  ;;  %v2151_v34 = vpop.eup %2150 }
 0x3c0   : > { %869 = vadd.xlane.f32.xlu2 %v868_v31  ;;  %v865_v35 = vsel %vm608_vm3, %v2151_v34, 0.0 }
 0x3c1   : > { %v947_v32 = vpop.permute.xlu0 %946 }
 0x3c2   : > { %v952_v33 = vsel %vm663_vm2, %v947_v32, 0 }
 0x3c3   : > { %961 = vmatpush.bf16.msra.mxu0 %v952_v33 }
 0x3c8   : > { %866 = vadd.xlane.f32.xlu2 %v865_v35 }
 0x3c9   : > { %v1014_v36 = vpop.permute.xlu0 %1013 }
 0x3cb   : > { %v905_v37 = vpop.permute.xlu1 %904 }
 0x3cc   : > { %v910_v38 = vsel %vm663_vm2, %v905_v37, 0 }
 0x3cd   : > { %919 = vmatpush.bf16.msrb.mxu2 %v910_v38 }
 0x3d1   : > { %1007 = vmatpush.bf16.xpose.msra.mxu2 %v998_v39  ;;  %v1039_v40 = vpop.permute.xlu0 %1038  ;;  %883 = vrot.lane.b32.xlu1 %v2333_v18, %s2210_s26  ;;  %s442_s26 = scalar_lea.vmem %s2668_s13, %s2002_s15 }
 0x3d2   : > { %v1044_v41 = vsel %vm516_vm1, %v1039_v40, 0 }
 0x3d3   : > { %1053 = vmatpush.bf16.xpose.msrb.mxu0 %v1044_v41 }
 0x3d9   : > { %990 = vrot.lane.b32.xlu1 %v2335_v22, %s2212_s28 }
 0x3e0   : > { %1015 = vrot.lane.b32.xlu2 %v2343_v26, %s2211_s27 }
 0x3e1   : > { %969 = vrot.lane.b32.xlu1 %v2333_v18, %s2211_s27 }
 0x3e8   : > { %967 = vrot.lane.b32.xlu2 %v2333_v18, %s2212_s28 }
 0x3e9   : > { %1036 = vrot.lane.b32.xlu1 %v2341_v25, %s2212_s28 }
 0x41e   : > { %v861_v43 = vpop.xlane.xlu2 %860 }
 0x42b   : > { %v864_v42 = vpop.xlane.xlu1 %863 }
 0x42c   : > { %2152 = vrcp.f32 %v864_v42 }
 0x432   : > { %v2153_v44 = vpop.eup %2152 }
 0x433   : > { %v876_v45 = vmul.f32 %v2153_v44, %v2147_v21  ;;  %v870_v46 = vpop.xlane.xlu2 %869 }
 0x434   : > { %2154 = vrcp.f32 %v870_v46 }
 0x435   : > { %v880_v48 = vpack.c.bf16 %v876_v45, %v876_v45  ;;  %2156 = vrcp.f32 %v861_v43 }
 0x437   : > { %2027 = vmatmul.msk.bf16.vlgmr.msrb.gmra.mxu2 %vm659_vm4, %v880_v48 }
 0x43a   : > { %v2155_v50 = vpop.eup %2154 }
 0x43b   : > { %v878_v52 = vmul.f32 %v2155_v50, %v2149_v30  ;;  %v867_v53 = vpop.xlane.xlu2 %866  ;;  %v2157_v56 = vpop.eup %2156 }
 0x43c   : > { %2158 = vrcp.f32 %v867_v53  ;;  %v875_v57 = vmul.f32 %v2157_v56, %v2421_v10 }
 0x43d   : > { %v882_v55 = vpack.c.bf16 %v878_v52, %v878_v52 }
 0x43e   : > { %v879_v0 = vpack.c.bf16 %v875_v57, %v875_v57 }
 0x43f   : > { %2029 = vmatmul.msk.bf16.vlgmr.msra.gmra.mxu0 %vm659_vm4, %v882_v55 }
 0x442   : > { %v2159_v58 = vpop.eup %2158 }
 0x443   : > { %v884_v59 = vpop.permute.xlu1 %883  ;;  %v877_v60 = vmul.f32 %v2159_v58, %v2151_v34  ;;  %v1016_v62 = vpop.permute.xlu2 %1015 }
 0x444   : > { %v889_v61 = vsel %vm663_vm2, %v884_v59, 0  ;;  %v1021_v63 = vsel %vm516_vm1, %v1016_v62, 0 }
 0x445   : > { %898 = vmatpush.bf16.msrb.mxu1 %v889_v61  ;;  %v881_v1 = vpack.c.bf16 %v877_v60, %v877_v60  ;;  %1030 = vmatpush.bf16.xpose.msra.mxu3 %v1021_v63 }
 0x447   : > { %2028 = vmatmul.msk.bf16.vlgmr.msrb.gmra.mxu3 %vm659_vm4, %v881_v1 }
 0x448   : > { %2026 = vmatmul.msk.bf16.vlgmr.msrb.gmra.mxu1 %vm659_vm4, %v879_v0 }
 0x44b   : > { %v991_v6 = vpop.permute.xlu1 %990  ;;  %v968_v9 = vpop.permute.xlu2 %967 }
 0x44c   : > { %2031 = vmatmul.msk.bf16.vlgmr.msra.gmra.mxu2 %vm516_vm1, %v991_v6 }
 0x453   : > { %v970_v7 = vpop.permute.xlu1 %969 }
 0x454   : > { %v975_v8 = vsel %vm516_vm1, %v970_v7, 0 }
 0x455   : > { %984 = vmatpush.bf16.xpose.msra.mxu1 %v975_v8 }
 0x457   : > { %2032 = vmatmul.msk.bf16.vlgmr.msra.gmra.mxu3 %vm516_vm1, %v1014_v36 }
 0x45b   : > { %v1037_v10 = vpop.permute.xlu1 %1036 }
 0x45c   : > { %2030 = vmatmul.msk.bf16.vlgmr.msra.gmra.mxu1 %vm516_vm1, %v968_v9  ;;  %2033 = vmatmul.msk.bf16.vlgmr.msrb.gmra.mxu0 %vm516_vm1, %v1037_v10 }
 0x4ba   : > { %v2457_v11 = vpop.f32.mrf.mxu2 }
 0x4bc   : > { %v2459_v12 = vpop.f32.mrf.mxu0 }
 0x4c2   : > { %v923_v13 = vpop.f32.mrf.mxu2 }
 0x4c4   : > { %v965_v14 = vpop.f32.mrf.mxu0 }
 0x4c5   : > { %v2461_v15 = vpop.f32.mrf.mxu1 }
 0x4ca   : > { %v2463_v16 = vpop.f32.mrf.mxu3 }
 0x4cd   : > { %v902_v17 = vpop.f32.mrf.mxu1 }
 0x4cf   : > { %v1009_v19 = vpop.f32.mrf.mxu2 }
 0x4d0   : > { %v1062_v20 = vsel %vm608_vm3, %v1009_v19, -inf }
 0x4d1   : > { %1063 = vmax.xlane.f32.xlu0 %v1062_v20 }
 0x4d2   : > { %v944_v21 = vpop.f32.mrf.mxu3 }
 0x4d7   : > { %v1011_v23 = vpop.f32.mrf.mxu2 }
 0x4d9   : > { %v986_v24 = vpop.f32.mrf.mxu1  ;;  %v1055_v27 = vpop.f32.mrf.mxu0 }
 0x4da   : > { %v1059_v28 = vsel %vm608_vm3, %v986_v24, -inf  ;;  %v1032_v29 = vpop.f32.mrf.mxu3  ;;  %v1068_v34 = vsel %vm608_vm3, %v1055_v27, -inf }
 0x4db   : > { %1060 = vmax.xlane.f32.xlu1 %v1059_v28  ;;  %v1065_v30 = vsel %vm608_vm3, %v1032_v29, -inf }
 0x4dc   : > { %1066 = vmax.xlane.f32.xlu2 %v1065_v30 }
 0x4e1   : > { %v988_v31 = vpop.f32.mrf.mxu1  ;;  %v1057_v32 = vpop.f32.mrf.mxu0 }
 0x4e2   : > { %v1034_v33 = vpop.f32.mrf.mxu3 }
 0x4e4   : > { %1069 = vmax.xlane.f32.xlu2 %v1068_v34 }
 0x4e5   : > { %1149 = vrot.lane.b32.xlu0 %v2343_v26, %s2213_s30 }
 0x4ed   : > { %1107 = vrot.lane.b32.xlu0 %v2333_v18, %s2213_s30 }
 0x4f4   : > { %1170 = vrot.lane.b32.xlu1 %v2341_v25, %s2213_s30 }
 0x4f5   : > { %1239 = vrot.lane.b32.xlu0 %v2343_v26, %s2214_s14 }
 0x4fc   : > { %1128 = vrot.lane.b32.xlu2 %v2335_v22, %s2213_s30 }
 0x4fd   : > { %1237 = vrot.lane.b32.xlu0 %v2343_v26, %s2215_s16 }
 0x504   : > { %1216 = vrot.lane.b32.xlu2 %v2335_v22, %s2214_s14 }
 0x50c   : > { %1214 = vrot.lane.b32.xlu2 %v2335_v22, %s2215_s16 }
 0x514   : > { %1193 = vrot.lane.b32.xlu2 %v2333_v18, %s2214_s14 }
 0x51c   : > { %1260 = vrot.lane.b32.xlu2 %v2341_v25, %s2215_s16 }
 0x544   : > { %v1064_v35 = vpop.xlane.xlu0 %1063 }
 0x545   : > { %v1072_v36 = vsub.f32 %v1009_v19, %v1064_v35 }
 0x547   : > { %v1077_v37 = vmul.f32 1.442695, %v1072_v36 }
 0x549   : > { %2160 = vpow2.f32 %v1077_v37 }
 0x54e   : > { %v1061_v38 = vpop.xlane.xlu1 %1060 }
 0x54f   : > { %v2161_v39 = vpop.eup %2160  ;;  %v1071_v40 = vsub.f32 %v986_v24, %v1061_v38  ;;  %v1067_v41 = vpop.xlane.xlu2 %1066 }
 0x550   : > { %v1086_v42 = vsel %vm608_vm3, %v2161_v39, 0.0  ;;  %v1073_v53 = vsub.f32 %v1032_v29, %v1067_v41 }
 0x551   : > { %v1075_v43 = vmul.f32 1.442695, %v1071_v40  ;;  %1087 = vadd.xlane.f32.xlu0 %v1086_v42 }
 0x552   : > { %v1079_v56 = vmul.f32 1.442695, %v1073_v53 }
 0x553   : > { %2162 = vpow2.f32 %v1075_v43 }
 0x557   : > { %v1150_v44 = vpop.permute.xlu0 %1149  ;;  %v1070_v45 = vpop.xlane.xlu2 %1069 }
 0x558   : > { %v1155_v46 = vsel %vm663_vm2, %v1150_v44, 0  ;;  %v1074_v50 = vsub.f32 %v1055_v27, %v1070_v45 }
 0x559   : > { %v2163_v48 = vpop.eup %2162  ;;  %1164 = vmatpush.bf16.msrb.mxu3 %v1155_v46 }
 0x55a   : > { %v1083_v52 = vsel %vm608_vm3, %v2163_v48, 0.0  ;;  %v1081_v55 = vmul.f32 1.442695, %v1074_v50 }
 0x55b   : > { %1084 = vadd.xlane.f32.xlu1 %v1083_v52 }
 0x55c   : > { %2164 = vpow2.f32 %v1081_v55 }
 0x55d   : > { %2166 = vpow2.f32 %v1079_v56 }
 0x55f   : > { %v1108_v57 = vpop.permute.xlu0 %1107  ;;  %v1129_v58 = vpop.permute.xlu2 %1128 }
 0x560   : > { %v1113_v59 = vsel %vm663_vm2, %v1108_v57, 0  ;;  %v1134_v60 = vsel %vm663_vm2, %v1129_v58, 0 }
 0x561   : > { %1122 = vmatpush.bf16.msrb.mxu1 %v1113_v59  ;;  %1143 = vmatpush.bf16.msrb.mxu2 %v1134_v60 }
 0x562   : > { %v2165_v61 = vpop.eup %2164 }
 0x563   : > { %v1092_v62 = vsel %vm608_vm3, %v2165_v61, 0.0  ;;  %v2167_v8 = vpop.eup %2166 }
 0x564   : > { %1093 = vadd.xlane.f32.xlu1 %v1092_v62  ;;  %v1089_v10 = vsel %vm608_vm3, %v2167_v8, 0.0 }
 0x565   : > { %1262 = vrot.lane.b32.xlu0 %v2341_v25, %s2214_s14 }
 0x566   : > { %v1171_v63 = vpop.permute.xlu1 %1170 }
 0x567   : > { %v1176_v0 = vsel %vm663_vm2, %v1171_v63, 0  ;;  %v1240_v1 = vpop.permute.xlu0 %1239  ;;  %v1217_v6 = vpop.permute.xlu2 %1216 }
 0x568   : > { %v1245_v7 = vsel %vm516_vm1, %v1240_v1, 0  ;;  %1185 = vmatpush.bf16.msra.mxu0 %v1176_v0  ;;  %v1222_v9 = vsel %vm516_vm1, %v1217_v6, 0 }
 0x569   : > { %1254 = vmatpush.bf16.xpose.msra.mxu3 %v1245_v7  ;;  %1231 = vmatpush.bf16.xpose.msra.mxu2 %v1222_v9 }
 0x56c   : > { %1090 = vadd.xlane.f32.xlu1 %v1089_v10 }
 0x56f   : > { %v1215_v13 = vpop.permute.xlu2 %1214  ;;  %v1238_v19 = vpop.permute.xlu0 %1237 }
 0x577   : > { %v1194_v14 = vpop.permute.xlu2 %1193 }
 0x578   : > { %v1199_v17 = vsel %vm516_vm1, %v1194_v14, 0 }
 0x579   : > { %1208 = vmatpush.bf16.xpose.msra.mxu1 %v1199_v17 }
 0x57f   : > { %v1261_v41 = vpop.permute.xlu2 %1260 }
 0x585   : > { %1191 = vrot.lane.b32.xlu1 %v2333_v18, %s2215_s16 }
 0x5c4   : > { %v1088_v20 = vpop.xlane.xlu0 %1087 }
 0x5c5   : > { %2168 = vrcp.f32 %v1088_v20 }
 0x5cb   : > { %v2169_v21 = vpop.eup %2168 }
 0x5cc   : > { %v1100_v23 = vmul.f32 %v2169_v21, %v2161_v39 }
 0x5ce   : > { %v1104_v24 = vpack.c.bf16 %v1100_v23, %v1100_v23  ;;  %v1085_v27 = vpop.xlane.xlu1 %1084 }
 0x5cf   : > { %2170 = vrcp.f32 %v1085_v27 }
 0x5d0   : > { %2035 = vmatmul.msk.bf16.vlgmr.msrb.gmra.mxu2 %vm659_vm4, %v1104_v24 }
 0x5d5   : > { %v2171_v28 = vpop.eup %2170 }
 0x5d6   : > { %v1099_v29 = vmul.f32 %v2171_v28, %v2163_v48 }
 0x5d7   : > { %v1263_v30 = vpop.permute.xlu0 %1262  ;;  %v1094_v33 = vpop.xlane.xlu1 %1093 }
 0x5d8   : > { %v1103_v31 = vpack.c.bf16 %v1099_v29, %v1099_v29  ;;  %v1268_v32 = vsel %vm516_vm1, %v1263_v30, 0  ;;  %2172 = vrcp.f32 %v1094_v33 }
 0x5d9   : > { %1277 = vmatpush.bf16.xpose.msrb.mxu0 %v1268_v32 }
 0x5da   : > { %2034 = vmatmul.msk.bf16.vlgmr.msrb.gmra.mxu1 %vm659_vm4, %v1103_v31 }
 0x5de   : > { %v2173_v34 = vpop.eup %2172 }
 0x5df   : > { %v1102_v35 = vmul.f32 %v2173_v34, %v2165_v61  ;;  %v1091_v36 = vpop.xlane.xlu1 %1090 }
 0x5e0   : > { %2039 = vmatmul.msk.bf16.vlgmr.msra.gmra.mxu2 %vm516_vm1, %v1215_v13  ;;  %2174 = vrcp.f32 %v1091_v36 }
 0x5e1   : > { %v1106_v37 = vpack.c.bf16 %v1102_v35, %v1102_v35 }
 0x5e3   : > { %2037 = vmatmul.msk.bf16.vlgmr.msra.gmra.mxu0 %vm659_vm4, %v1106_v37 }
 0x5e6   : > { %v2175_v38 = vpop.eup %2174 }
 0x5e7   : > { %v1101_v39 = vmul.f32 %v2175_v38, %v2167_v8 }
 0x5e9   : > { %v1105_v40 = vpack.c.bf16 %v1101_v39, %v1101_v39 }
 0x5eb   : > { %2036 = vmatmul.msk.bf16.vlgmr.msrb.gmra.mxu3 %vm659_vm4, %v1105_v40 }
 0x5f3   : > { %2041 = vmatmul.msk.bf16.vlgmr.msrb.gmra.mxu0 %vm516_vm1, %v1261_v41 }
 0x5f7   : > { %v1192_v42 = vpop.permute.xlu1 %1191 }
 0x5f8   : > { %2038 = vmatmul.msk.bf16.vlgmr.msra.gmra.mxu1 %vm516_vm1, %v1192_v42 }
 0x5fb   : > { %2040 = vmatmul.msk.bf16.vlgmr.msra.gmra.mxu3 %vm516_vm1, %v1238_v19 }
 0x653   : > { %v2509_v43 = vpop.f32.mrf.mxu2 }
 0x657   : > { %v2511_v44 = vpop.f32.mrf.mxu1 }
 0x65b   : > { %v1147_v45 = vpop.f32.mrf.mxu2 }
 0x65f   : > { %v1126_v46 = vpop.f32.mrf.mxu1 }
 0x660   : > { %v2513_v48 = vpop.f32.mrf.mxu0 }
 0x663   : > { %v1233_v50 = vpop.f32.mrf.mxu2 }
 0x664   : > { %v1286_v52 = vsel %vm608_vm3, %v1233_v50, -inf }
 0x665   : > { %1287 = vmax.xlane.f32.xlu0 %v1286_v52 }
 0x668   : > { %v1189_v53 = vpop.f32.mrf.mxu0 }
 0x66b   : > { %v1235_v55 = vpop.f32.mrf.mxu2 }
 0x66e   : > { %v1166_v56 = vpop.f32.mrf.mxu3 }
 0x670   : > { %v1279_v57 = vpop.f32.mrf.mxu0 }
 0x671   : > { %v1292_v58 = vsel %vm608_vm3, %v1279_v57, -inf }
 0x672   : > { %1293 = vmax.xlane.f32.xlu0 %v1292_v58 }
 0x675   : > { %v1210_v59 = vpop.f32.mrf.mxu1 }
 0x676   : > { %v1168_v60 = vpop.f32.mrf.mxu3  ;;  %v1283_v61 = vsel %vm608_vm3, %v1210_v59, -inf }
 0x677   : > { %1284 = vmax.xlane.f32.xlu2 %v1283_v61 }
 0x678   : > { %v1281_v62 = vpop.f32.mrf.mxu0 }
 0x67d   : > { %v1212_v63 = vpop.f32.mrf.mxu1 }
 0x67e   : > { %v1256_v0 = vpop.f32.mrf.mxu3 }
 0x67f   : > { %v1289_v1 = vsel %vm608_vm3, %v1256_v0, -inf }
 0x680   : > { %1290 = vmax.xlane.f32.xlu1 %v1289_v1 }
 0x686   : > { %v1258_v6 = vpop.f32.mrf.mxu3 }
 0x68f   : > { %1352 = vrot.lane.b32.xlu2 %v2335_v22, %s2216_s17 }
 0x6d8   : > { %v1288_v7 = vpop.xlane.xlu0 %1287 }
 0x6d9   : > { %v1296_v10 = vsub.f32 %v1233_v50, %v1288_v7  ;;  %v2086_v7 = vld [vmem:[%s2658_s3 + $0x8] sm:$0xff] }
 0x6db   : > { %v1301_v19 = vmul.f32 1.442695, %v1296_v10  ;;  %v2085_v10 = vld [vmem:[%s2658_s3] sm:$0xff] }
 0x6e5   : > { %v1294_v8 = vpop.xlane.xlu0 %1293 }
 0x6e6   : > { %v1298_v9 = vsub.f32 %v1279_v57, %v1294_v8 }
 0x6e8   : > { %v1305_v13 = vmul.f32 1.442695, %v1298_v9 }
 0x6ea   : > { %2176 = vpow2.f32 %v1305_v13  ;;  %v1285_v14 = vpop.xlane.xlu2 %1284 }
 0x6eb   : > { %v1295_v17 = vsub.f32 %v1210_v59, %v1285_v14 }
 0x6ed   : > { %v1299_v20 = vmul.f32 1.442695, %v1295_v17 }
 0x6ef   : > { %2178 = vpow2.f32 %v1299_v20 }
 0x6f0   : > { %v2177_v21 = vpop.eup %2176  ;;  %2180 = vpow2.f32 %v1301_v19 }
 0x6f1   : > { %v1316_v23 = vsel %vm608_vm3, %v2177_v21, 0.0 }
 0x6f2   : > { %1317 = vadd.xlane.f32.xlu1 %v1316_v23  ;;  %v1353_v24 = vpop.permute.xlu2 %1352 }
 0x6f3   : > { %v1358_v27 = vsel %vm663_vm2, %v1353_v24, 0  ;;  %v1291_v22 = vpop.xlane.xlu1 %1290 }
 0x6f4   : > { %v1297_v28 = vsub.f32 %v1256_v0, %v1291_v22  ;;  %1367 = vmatpush.bf16.msrb.mxu2 %v1358_v27 }
 0x6f5   : > { %v2179_v29 = vpop.eup %2178 }
 0x6f6   : > { %v2181_v30 = vpop.eup %2180  ;;  %v1303_v31 = vmul.f32 1.442695, %v1297_v28  ;;  %v1307_v32 = vsel %vm608_vm3, %v2179_v29, 0.0 }
 0x6f7   : > { %1308 = vadd.xlane.f32.xlu0 %v1307_v32  ;;  %v1310_v33 = vsel %vm608_vm3, %v2181_v30, 0.0 }
 0x6f8   : > { %2182 = vpow2.f32 %v1303_v31 }
 0x6fa   : > { %1311 = vadd.xlane.f32.xlu1 %v1310_v33 }
 0x6fe   : > { %v2183_v34 = vpop.eup %2182 }
 0x6ff   : > { %v1313_v35 = vsel %vm608_vm3, %v2183_v34, 0.0 }
 0x700   : > { %1314 = vadd.xlane.f32.xlu2 %v1313_v35 }
 0x70b   : > { %1373 = vrot.lane.b32.xlu0 %v2343_v26, %s2216_s17 }
 0x713   : > { %1331 = vrot.lane.b32.xlu1 %v2333_v18, %s2216_s17  ;;  %1419 = vrot.lane.b32.xlu0 %v2461_v15, %s2217_s18 }
 0x718   : > { %1394 = vrot.lane.b32.xlu2 %v2341_v25, %s2216_s17 }
 0x71b   : > { %1421 = vrot.lane.b32.xlu1 %v2457_v11, %s2217_s18  ;;  %1425 = vrot.lane.b32.xlu0 %v2459_v12, %s2217_s18 }
 0x720   : > { %1423 = vrot.lane.b32.xlu2 %v2463_v16, %s2217_s18 }
 0x723   : > { %1435 = vrot.lane.b32.xlu1 %v2511_v44, %s2218_s19  ;;  %1439 = vrot.lane.b32.xlu0 %v1166_v56, %s2218_s19 }
 0x728   : > { %1437 = vrot.lane.b32.xlu2 %v2509_v43, %s2218_s19 }
 0x72b   : > { %1441 = vrot.lane.b32.xlu1 %v2513_v48, %s2218_s19 }
 0x765   : > { %v1318_v18 = vpop.xlane.xlu1 %1317 }
 0x76a   : > { %v1309_v11 = vpop.xlane.xlu0 %1308 }
 0x76d   : > { %v1312_v26 = vpop.xlane.xlu1 %1311 }
 0x76e   : > { %2184 = vrcp.f32 %v1312_v26 }
 0x76f   : > { %2186 = vrcp.f32 %v1318_v18 }
 0x773   : > { %v1315_v15 = vpop.xlane.xlu2 %1314 }
 0x774   : > { %v2185_v25 = vpop.eup %2184  ;;  %2188 = vrcp.f32 %v1315_v15 }
 0x775   : > { %v1324_v36 = vmul.f32 %v2185_v25, %v2181_v30  ;;  %v2187_v12 = vpop.eup %2186  ;;  %2190 = vrcp.f32 %v1309_v11 }
 0x776   : > { %v1326_v38 = vmul.f32 %v2187_v12, %v2177_v21 }
 0x777   : > { %v1328_v37 = vpack.c.bf16 %v1324_v36, %v1324_v36 }
 0x778   : > { %v1330_v43 = vpack.c.bf16 %v1326_v38, %v1326_v38 }
 0x779   : > { %2043 = vmatmul.msk.bf16.vlgmr.msrb.gmra.mxu2 %vm659_vm4, %v1328_v37 }
 0x77a   : > { %v2189_v16 = vpop.eup %2188 }
 0x77b   : > { %v1395_v39 = vpop.permute.xlu2 %1394  ;;  %v1325_v40 = vmul.f32 %v2189_v16, %v2183_v34  ;;  %v2191_v46 = vpop.eup %2190 }
 0x77c   : > { %v1400_v41 = vsel %vm663_vm2, %v1395_v39, 0  ;;  %v1323_v48 = vmul.f32 %v2191_v46, %v2179_v29 }
 0x77d   : > { %v1374_v42 = vpop.permute.xlu0 %1373  ;;  %1409 = vmatpush.bf16.msra.mxu0 %v1400_v41  ;;  %v1329_v45 = vpack.c.bf16 %v1325_v40, %v1325_v40 }
 0x77e   : > { %v1379_v44 = vsel %vm663_vm2, %v1374_v42, 0  ;;  %v1327_v53 = vpack.c.bf16 %v1323_v48, %v1323_v48 }
 0x77f   : > { %1388 = vmatpush.bf16.msrb.mxu3 %v1379_v44 }
 0x780   : > { %2045 = vmatmul.msk.bf16.vlgmr.msra.gmra.mxu0 %vm659_vm4, %v1330_v43 }
 0x782   : > { %2044 = vmatmul.msk.bf16.vlgmr.msrb.gmra.mxu3 %vm659_vm4, %v1329_v45 }
 0x783   : > { %v1424_v63 = vpop.permute.xlu2 %1423 }
 0x784   : > { %v1465_v31 = vsel %vm516_vm1, %v2404_v54, %v1424_v63 }
 0x785   : > { %v1332_v50 = vpop.permute.xlu1 %1331  ;;  %v1420_v0 = vpop.permute.xlu0 %1419 }
 0x786   : > { %v1337_v52 = vsel %vm663_vm2, %v1332_v50, 0  ;;  %v1463_v13 = vsel %vm516_vm1, %v2397_v47, %v1420_v0  ;;  %v2221_v50 = vmov 269488144  }
 0x787   : > { %1346 = vmatpush.bf16.msrb.mxu1 %v1337_v52  ;;  %v1576_v52 = vunpack.c.l.s4 %v2221_v50 }
 0x78a   : > { %2042 = vmatmul.msk.bf16.vlgmr.msrb.gmra.mxu1 %vm659_vm4, %v1327_v53  ;;  %v2222_v53 = vmov 842150450  }
 0x78b   : > { %v1438_v6 = vpop.permute.xlu2 %1437  ;;  %1516 = vmatpush.bf16.msra.mxu1 %v2086_v7 }
 0x78d   : > { %v1422_v1 = vpop.permute.xlu1 %1421  ;;  %v1426_v8 = vpop.permute.xlu0 %1425 }
 0x78e   : > { %v1466_v23 = vsel %vm516_vm1, %v2401_v51, %v1426_v8  ;;  %v1464_v47 = vsel %vm516_vm1, %v2399_v49, %v1422_v1  ;;  %v2121_v49 = vld [vmem:[%s2659_s4] ss:$0 sm:$0xff] }
 0x78f   : > { %1517 = vmatpush.bf16.msra.mxu1 %v2085_v10  ;;  %v1469_v29 = vsel %vm1467_vm6, %v1464_v47, %v1438_v6  ;;  %v1538_v26 = vrot.slane %v2121_v49, 2  ;;  %v1539_v15 = vrot.slane %v2121_v49, 4  ;;  %v1540_v25 = vrot.slane %v2121_v49, 6 }
 0x795   : > { %v1436_v9 = vpop.permute.xlu1 %1435  ;;  %v1440_v20 = vpop.permute.xlu0 %1439 }
 0x796   : > { %v1468_v14 = vsel %vm1467_vm6, %v1463_v13, %v1436_v9  ;;  %v1470_v51 = vsel %vm1467_vm6, %v1465_v31, %v1440_v20  ;;  %v2087_v31 = vld [vmem:[%s2662_s7] sm:$0xff] }
 0x79d   : > { %v1442_v21 = vpop.permute.xlu1 %1441 }
 0x79e   : > { %v1471_v24 = vsel %vm1467_vm6, %v1466_v23, %v1442_v21 }
 0x7fc   : > { %v1369_v55 = vpop.f32.mrf.mxu2 }
 0x7fd   : > { %1453 = vrot.lane.b32.xlu0 %v1369_v55, %s2219_s20  ;;  %v1411_v56 = vpop.f32.mrf.mxu0  ;;  %v1580_v55 = vunpack.c.l.s4 %v2222_v53 }
 0x804   : > { %v1371_v57 = vpop.f32.mrf.mxu2 }
 0x805   : > { %v1390_v58 = vpop.f32.mrf.mxu3  ;;  %v1413_v59 = vpop.f32.mrf.mxu0 }
 0x806   : > { %1455 = vrot.lane.b32.xlu1 %v1390_v58, %s2219_s20  ;;  %v2224_v58 = vmov 1987475062  }
 0x807   : > { %v1348_v60 = vpop.f32.mrf.mxu1  ;;  %v1588_v59 = vunpack.c.l.s4 %v2224_v58  ;;  %v2089_v58 = vld [vmem:[%s2664_s9] sm:$0xff] }
 0x808   : > { %1451 = vrot.lane.b32.xlu2 %v1348_v60, %s2219_s20 }
 0x809   : > { %v2585_v0 = vunpack.c.0.s8 %v1588_v59  ;;  %v2124_v59 = vld [vmem:[%s2663_s8] ss:$0 sm:$0xff] }
 0x80d   : > { %v1392_v61 = vpop.f32.mrf.mxu3 }
 0x80e   : > { %v2579_v61 = vunpack.c.0.s8 %v1576_v52 }
 0x80f   : > { %v1350_v62 = vpop.f32.mrf.mxu1 }
 0x810   : > { %1457 = vrot.lane.b32.xlu2 %v1411_v56, %s2219_s20  ;;  %v2223_v56 = vmov 1414812756   ;;  %v2581_v62 = vunpack.c.0.s8 %v1580_v55 }
 0x811   : > { %v1584_v57 = vunpack.c.l.s4 %v2223_v56 }
 0x813   : > { %v2583_v63 = vunpack.c.0.s8 %v1584_v57  ;;  %v2090_v57 = vld [vmem:[%s2664_s9 + $0x8] sm:$0xff] }
 0x862   : > { %v1452_v17 = vpop.permute.xlu2 %1451 }
 0x863   : > { %v1473_v19 = vsel %vm1472_vm5, %v1468_v14, %v1452_v17 }
 0x864   : > { %1481 = vst [vmem:[#allocation1] ss:$4 sm:$0xff] %v1473_v19 }
 0x86a   : > { %v1458_v27 = vpop.permute.xlu2 %1457 }
 0x86b   : > { %v1476_v22 = vsel %vm1472_vm5, %v1471_v24, %v1458_v27 }
 0x86c   : > { %1487 = vst [vmem:[#allocation1 + $0x3] ss:$4 sm:$0xff] %v1476_v22 }
 0x86f   : > { %v1454_v28 = vpop.permute.xlu0 %1453 }
 0x870   : > { %v1474_v30 = vsel %vm1472_vm5, %v1469_v29, %v1454_v28  ;;  %v2088_v29 = vld [vmem:[%s2662_s7 + $0x8] sm:$0xff] }
 0x871   : > { %1483 = vst [vmem:[#allocation1 + $0x1] ss:$4 sm:$0xff] %v1474_v30  ;;  %1725 = vmatpush.bf16.msra.mxu2 %v2088_v29 }
 0x875   : > { %1726 = vmatpush.bf16.msra.mxu2 %v2087_v31 }
 0x878   : > { %v1456_v32 = vpop.permute.xlu1 %1455 }
 0x879   : > { %v1475_v33 = vsel %vm1472_vm5, %v1470_v51, %v1456_v32 }
 0x87a   : > { %1485 = vst [vmem:[#allocation1 + $0x2] ss:$4 sm:$0xff] %v1475_v33  ;;  %v2092_v33 = vld [vmem:[%s2664_s9 + $0x18] sm:$0xff] }
 0x87b   : > { %1774 = vmatpush.bf16.msra.mxu3 %v2092_v33 }
 0x881   : > { %v1488_v34 = vld.sshfl [vmem:[#allocation1] sm:$0xff pattern:$0x73625140] }
 0x882   : > { %v1490_v35 = vpack.c.bf16 %v1488_v34, %v1488_v34 }
 0x884   : > { %2054 = vmatmul.msk.bf16.vlgmr.msra.gmra.mxu1 %vm483_vm0, %v1490_v35  ;;  %v2091_v35 = vld [vmem:[%s2664_s9 + $0x10] sm:$0xff] }
 0x885   : > { %1775 = vmatpush.bf16.msra.mxu3 %v2091_v35 }
 0x889   : > { %1776 = vmatpush.bf16.msra.mxu3 %v2090_v57 }
 0x88d   : > { %1777 = vmatpush.bf16.msra.mxu3 %v2089_v58 }
 0x901   : > { %v1519_v18 = vpop.f32.mrf.mxu1 }
 0x902   : > { %v1524_v11 = vrot.slane %v1519_v18, 2  ;;  %v1525_v54 = vrot.slane %v1519_v18, 4  ;;  %v1526_v36 = vrot.slane %v1519_v18, 6  ;;  %v1530_v12 = vadd.f32 %v1519_v18, %v2317_v2  ;;  %v2122_v18 = vld [vmem:[%s2660_s5] ss:$0 sm:$0xff] }
 0x903   : > { %v2220_v2 = vmov 32.0  }
 0x904   : > { %v1531_v37 = vadd.f32 %v1524_v11, %v2319_v3  ;;  %v1532_v16 = vadd.f32 %v1525_v54, %v2321_v4  ;;  %v1533_v38 = vadd.f32 %v1526_v36, %v2323_v5  ;;  %v1544_v39 = vadd.f32 %v2121_v49, %v1530_v12 }
 0x905   : > { %2192 = vrcp.f32 %v2220_v2  ;;  %v1659_v11 = vrot.slane %v2122_v18, 2  ;;  %v1660_v54 = vrot.slane %v2122_v18, 4  ;;  %v1661_v36 = vrot.slane %v2122_v18, 6 }
 0x906   : > { %v1545_v40 = vadd.f32 %v1538_v26, %v1531_v37  ;;  %v1546_v41 = vadd.f32 %v1539_v15, %v1532_v16  ;;  %v1547_v42 = vadd.f32 %v1540_v25, %v1533_v38  ;;  %1554 = vst [vmem:[#allocation1] ss:$4 sm:$0xff] %v1544_v39  ;;  %v2123_v15 = vld [vmem:[%s2661_s6] ss:$0 sm:$0xff] }
 0x907   : > { %v1674_v2 = vrot.slane %v2123_v15, 6 }
 0x908   : > { %1556 = vst [vmem:[#allocation1 + $0x1] ss:$4 sm:$0xff] %v1545_v40 }
 0x909   : > { %1558 = vst [vmem:[#allocation1 + $0x2] ss:$4 sm:$0xff] %v1546_v41  ;;  %v1521_v43 = vpop.f32.mrf.mxu1 }
 0x90a   : > { %1560 = vst [vmem:[#allocation1 + $0x3] ss:$4 sm:$0xff] %v1547_v42 }
 0x90b   : > { %v2193_v3 = vpop.eup %2192 }
 0x90c   : > { %v1567_v46 = vmul.f32 32.0, %v2193_v3  ;;  %vm1571_vm7 = vweird.f32 %v2193_v3 }
 0x90e   : > { %v1568_v4 = vsub.f32 1.0, %v1567_v46 }
 0x910   : > { %v1569_v48 = vmul.f32 %v2193_v3, %v1568_v4 }
 0x911   : > { %v1561_v44 = vld.sshfl [vmem:[#allocation1] sm:$0xff pattern:$0x73625140] }
 0x912   : > { %v1563_v45 = vsel %vm483_vm0, %v1561_v44, 0.0  ;;  %v1570_v5 = vadd.f32 %v2193_v3, %v1569_v48 }
 0x913   : > { %1564 = vadd.xlane.f32.xlu0 %v1563_v45 }
 0x914   : > { %v2577_v60 = vsel %vm1571_vm7, %v2193_v3, %v1570_v5 }
 0x986   : > { %v1565_v1 = vpop.xlane.xlu0 %1564 }
 0x987   : > { %v1573_v6 = vmul.f32 %v2577_v60, %v1565_v1 }
 0x989   : > { %v1578_v7 = vperm.slane %v1573_v6, %v2579_v61  ;;  %v1582_v8 = vperm.slane %v1573_v6, %v2581_v62  ;;  %v1586_v9 = vperm.slane %v1573_v6, %v2583_v63  ;;  %v1590_v10 = vperm.slane %v1573_v6, %v2585_v0 }
 0x98b   : > { %v1595_v13 = vsub.f32 %v1544_v39, %v1578_v7  ;;  %v1596_v14 = vsub.f32 %v1545_v40, %v1582_v8  ;;  %v1597_v17 = vsub.f32 %v1546_v41, %v1586_v9  ;;  %v1598_v19 = vsub.f32 %v1547_v42, %v1590_v10  ;;  %v2125_v10 = vld [vmem:[%s2665_s10] ss:$0 sm:$0xff] }
 0x98c   : > { %v1672_v40 = vrot.slane %v2123_v15, 2  ;;  %v1673_v41 = vrot.slane %v2123_v15, 4 }
 0x98d   : > { %v1599_v20 = vmul.f32 %v1595_v13, %v1595_v13  ;;  %v1600_v21 = vmul.f32 %v1596_v14, %v1596_v14  ;;  %v1601_v23 = vmul.f32 %v1597_v17, %v1597_v17  ;;  %v1602_v24 = vmul.f32 %v1598_v19, %v1598_v19 }
 0x98f   : > { %1607 = vst [vmem:[#allocation1] ss:$4 sm:$0xff] %v1599_v20 }
 0x990   : > { %1609 = vst [vmem:[#allocation1 + $0x1] ss:$4 sm:$0xff] %v1600_v21 }
 0x991   : > { %1611 = vst [vmem:[#allocation1 + $0x2] ss:$4 sm:$0xff] %v1601_v23 }
 0x992   : > { %1613 = vst [vmem:[#allocation1 + $0x3] ss:$4 sm:$0xff] %v1602_v24 }
 0x999   : > { %v1614_v27 = vld.sshfl [vmem:[#allocation1] sm:$0xff pattern:$0x73625140] }
 0x99a   : > { %v1616_v22 = vsel %vm483_vm0, %v1614_v27, 0.0 }
 0x99b   : > { %1617 = vadd.xlane.f32.xlu1 %v1616_v22 }
 0xa0e   : > { %v1618_v47 = vpop.xlane.xlu1 %1617 }
 0xa0f   : > { %v1619_v28 = vmul.f32 %v1618_v47, %v2577_v60 }
 0xa11   : > { %v1620_v30 = vadd.f32 1e-05, %v1619_v28 }
 0xa13   : > { %2194 = vrsqrt.f32 %v1620_v30  ;;  %vm1627_vm9 = vweird.f32 %v1620_v30 }
 0xa19   : > { %v2195_v51 = vpop.eup %2194 }
 0xa1a   : > { %v1622_v32 = vmul.f32 %v2195_v51, %v1620_v30  ;;  %vm1628_vm8 = vweird.f32 %v2195_v51 }
 0xa1b   : > { %vm1629_vm10 = vmor %vm1627_vm9, %vm1628_vm8 }
 0xa1c   : > { %v1623_v34 = vmul.f32 %v2195_v51, %v1622_v32 }
 0xa1e   : > { %v1624_v49 = vmul.f32 0.5, %v1623_v34 }
 0xa20   : > { %v1625_v26 = vsub.f32 1.5, %v1624_v49 }
 0xa22   : > { %v1626_v25 = vmul.f32 %v2195_v51, %v1625_v26 }
 0xa24   : > { %v1630_v12 = vsel %vm1629_vm10, %v2195_v51, %v1626_v25 }
 0xa25   : > { %v1635_v37 = vperm.slane %v1630_v12, %v2579_v61  ;;  %v1639_v16 = vperm.slane %v1630_v12, %v2581_v62  ;;  %v1643_v38 = vperm.slane %v1630_v12, %v2583_v63  ;;  %v1647_v39 = vperm.slane %v1630_v12, %v2585_v0 }
 0xa27   : > { %v1652_v42 = vmul.f32 %v1635_v37, %v1595_v13  ;;  %v1653_v43 = vmul.f32 %v1639_v16, %v1596_v14  ;;  %v1654_v44 = vmul.f32 %v1643_v38, %v1597_v17  ;;  %v1655_v45 = vmul.f32 %v1647_v39, %v1598_v19 }
 0xa28   : > { %v1798_v14 = vrot.slane %v2125_v10, 2  ;;  %v1799_v17 = vrot.slane %v2125_v10, 4  ;;  %v1800_v19 = vrot.slane %v2125_v10, 6 }
 0xa29   : > { %v1665_v3 = vmul.f32 %v2122_v18, %v1652_v42  ;;  %v1666_v46 = vmul.f32 %v1659_v11, %v1653_v43  ;;  %v1667_v4 = vmul.f32 %v1660_v54, %v1654_v44  ;;  %v1668_v48 = vmul.f32 %v1661_v36, %v1655_v45 }
 0xa2b   : > { %v1678_v5 = vadd.f32 %v2123_v15, %v1665_v3  ;;  %v1679_v50 = vadd.f32 %v1672_v40, %v1666_v46  ;;  %v1680_v52 = vadd.f32 %v1673_v41, %v1667_v4  ;;  %v1681_v53 = vadd.f32 %v1674_v2, %v1668_v48  ;;  %v2126_v46 = vld [vmem:[%s2666_s11] ss:$0 sm:$0xff] }
 0xa2c   : > { %v2127_v48 = vld [vmem:[%s2667_s12] ss:$0 sm:$0xff]  ;;  %v1914_v58 = vrot.slane %v2126_v46, 6 }
 0xa2d   : > { %1686 = vst [vmem:[#allocation1] ss:$4 sm:$0xff] %v1678_v5 }
 0xa2e   : > { %1688 = vst [vmem:[#allocation1 + $0x1] ss:$4 sm:$0xff] %v1679_v50 }
 0xa2f   : > { %1690 = vst [vmem:[#allocation1 + $0x2] ss:$4 sm:$0xff] %v1680_v52 }
 0xa30   : > { %1692 = vst [vmem:[#allocation1 + $0x3] ss:$4 sm:$0xff] %v1681_v53 }
 0xa37   : > { %v1693_v55 = vld.sshfl [vmem:[#allocation1] sm:$0xff pattern:$0x73625140] }
 0xa38   : > { %v1695_v56 = vpack.c.bf16 %v1693_v55, %v1693_v55 }
 0xa3a   : > { %2063 = vmatmul.msk.bf16.vlgmr.msra.gmra.mxu2 %vm483_vm0, %v1695_v56 }
 0xabd   : > { %v1728_v1 = vpop.f32.mrf.mxu2 }
 0xabe   : > { %v1729_v6 = vadd.f32 %v2124_v59, %v1728_v1  ;;  %v1925_v59 = vrot.slane %v2127_v48, 2 }
 0xac0   : > { %v1732_v7 = vmax.f32 %v1729_v6, 0.0 }
 0xac2   : > { %v1733_v8 = vpack.c.bf16 %v1732_v7, %v1732_v7 }
 0xac4   : > { %2080 = vmatmul.msk.bf16.vlgmr.msra.gmra.mxu3 %vm1766_vm11, %v1733_v8 }
 0xac5   : > { %v1730_v9 = vpop.f32.mrf.mxu2 }
 0xac6   : > { %v1926_v9 = vrot.slane %v2127_v48, 4 }
 0xb47   : > { %v1779_v13 = vpop.f32.mrf.mxu3 }
 0xb48   : > { %v1784_v20 = vrot.slane %v1779_v13, 2  ;;  %v1785_v21 = vrot.slane %v1779_v13, 4  ;;  %v1786_v23 = vrot.slane %v1779_v13, 6  ;;  %v1790_v24 = vadd.f32 %v1779_v13, %v1678_v5 }
 0xb4a   : > { %v1791_v27 = vadd.f32 %v1784_v20, %v1679_v50  ;;  %v1792_v22 = vadd.f32 %v1785_v21, %v1680_v52  ;;  %v1793_v47 = vadd.f32 %v1786_v23, %v1681_v53  ;;  %v1804_v28 = vadd.f32 %v2125_v10, %v1790_v24 }
 0xb4b   : > { %v1913_v50 = vrot.slane %v2126_v46, 4 }
 0xb4c   : > { %v1805_v29 = vadd.f32 %v1798_v14, %v1791_v27  ;;  %v1806_v30 = vadd.f32 %v1799_v17, %v1792_v22  ;;  %v1807_v31 = vadd.f32 %v1800_v19, %v1793_v47  ;;  %1814 = vst [vmem:[#allocation1] ss:$4 sm:$0xff] %v1804_v28 }
 0xb4e   : > { %1816 = vst [vmem:[#allocation1 + $0x1] ss:$4 sm:$0xff] %v1805_v29 }
 0xb4f   : > { %1818 = vst [vmem:[#allocation1 + $0x2] ss:$4 sm:$0xff] %v1806_v30  ;;  %v1781_v51 = vpop.f32.mrf.mxu3 }
 0xb50   : > { %1820 = vst [vmem:[#allocation1 + $0x3] ss:$4 sm:$0xff] %v1807_v31 }
 0xb57   : > { %v1821_v32 = vld.sshfl [vmem:[#allocation1] sm:$0xff pattern:$0x73625140] }
 0xb58   : > { %v1823_v33 = vsel %vm483_vm0, %v1821_v32, 0.0 }
 0xb59   : > { %1824 = vadd.xlane.f32.xlu2 %v1823_v33 }
 0xbcc   : > { %v1825_v34 = vpop.xlane.xlu2 %1824 }
 0xbcd   : > { %v1826_v35 = vmul.f32 %v1825_v34, %v2577_v60 }
 0xbcf   : > { %v1831_v49 = vperm.slane %v1826_v35, %v2579_v61  ;;  %v1835_v18 = vperm.slane %v1826_v35, %v2581_v62  ;;  %v1839_v26 = vperm.slane %v1826_v35, %v2583_v63  ;;  %v1843_v15 = vperm.slane %v1826_v35, %v2585_v0 }
 0xbd1   : > { %v1848_v25 = vsub.f32 %v1804_v28, %v1831_v49  ;;  %v1849_v11 = vsub.f32 %v1805_v29, %v1835_v18  ;;  %v1850_v54 = vsub.f32 %v1806_v30, %v1839_v26  ;;  %v1851_v36 = vsub.f32 %v1807_v31, %v1843_v15 }
 0xbd3   : > { %v1852_v12 = vmul.f32 %v1848_v25, %v1848_v25  ;;  %v1853_v37 = vmul.f32 %v1849_v11, %v1849_v11  ;;  %v1854_v16 = vmul.f32 %v1850_v54, %v1850_v54  ;;  %v1855_v38 = vmul.f32 %v1851_v36, %v1851_v36 }
 0xbd5   : > { %1860 = vst [vmem:[#allocation1] ss:$4 sm:$0xff] %v1852_v12 }
 0xbd6   : > { %1862 = vst [vmem:[#allocation1 + $0x1] ss:$4 sm:$0xff] %v1853_v37 }
 0xbd7   : > { %1864 = vst [vmem:[#allocation1 + $0x2] ss:$4 sm:$0xff] %v1854_v16 }
 0xbd8   : > { %1866 = vst [vmem:[#allocation1 + $0x3] ss:$4 sm:$0xff] %v1855_v38 }
 0xbdf   : > { %v1867_v39 = vld.sshfl [vmem:[#allocation1] sm:$0xff pattern:$0x73625140] }
 0xbe0   : > { %v1869_v40 = vsel %vm483_vm0, %v1867_v39, 0.0 }
 0xbe1   : > { %1870 = vadd.xlane.f32.xlu0 %v1869_v40 }
 0xc54   : > { %v1871_v41 = vpop.xlane.xlu0 %1870 }
 0xc55   : > { %v1872_v42 = vmul.f32 %v1871_v41, %v2577_v60  ;;  %v1912_v60 = vrot.slane %v2126_v46, 2 }
 0xc57   : > { %v1873_v43 = vadd.f32 1e-05, %v1872_v42 }
 0xc59   : > { %2196 = vrsqrt.f32 %v1873_v43  ;;  %vm1880_vm13 = vweird.f32 %v1873_v43 }
 0xc5f   : > { %v2197_v44 = vpop.eup %2196 }
 0xc60   : > { %v1875_v45 = vmul.f32 %v2197_v44, %v1873_v43  ;;  %vm1881_vm12 = vweird.f32 %v2197_v44 }
 0xc61   : > { %vm1882_vm14 = vmor %vm1880_vm13, %vm1881_vm12 }
 0xc62   : > { %v1876_v2 = vmul.f32 %v2197_v44, %v1875_v45 }
 0xc64   : > { %v1877_v3 = vmul.f32 0.5, %v1876_v2 }
 0xc66   : > { %v1878_v4 = vsub.f32 1.5, %v1877_v3 }
 0xc68   : > { %v1879_v5 = vmul.f32 %v2197_v44, %v1878_v4 }
 0xc6a   : > { %v1883_v52 = vsel %vm1882_vm14, %v2197_v44, %v1879_v5 }
 0xc6b   : > { %v1888_v53 = vperm.slane %v1883_v52, %v2579_v61  ;;  %v1892_v55 = vperm.slane %v1883_v52, %v2581_v62  ;;  %v1896_v56 = vperm.slane %v1883_v52, %v2583_v63  ;;  %v1900_v57 = vperm.slane %v1883_v52, %v2585_v0 }
 0xc6c   : > { %v1927_v61 = vrot.slane %v2127_v48, 6 }
 0xc6d   : > { %v1905_v1 = vmul.f32 %v1888_v53, %v1848_v25  ;;  %v1906_v6 = vmul.f32 %v1892_v55, %v1849_v11  ;;  %v1907_v7 = vmul.f32 %v1896_v56, %v1850_v54  ;;  %v1908_v8 = vmul.f32 %v1900_v57, %v1851_v36 }
 0xc6f   : > { %v1918_v10 = vmul.f32 %v2126_v46, %v1905_v1  ;;  %v1919_v13 = vmul.f32 %v1912_v60, %v1906_v6  ;;  %v1920_v14 = vmul.f32 %v1913_v50, %v1907_v7  ;;  %v1921_v62 = vmul.f32 %v1914_v58, %v1908_v8 }
 0xc71   : > { %v1931_v63 = vadd.f32 %v2127_v48, %v1918_v10  ;;  %v1932_v0 = vadd.f32 %v1925_v59, %v1919_v13  ;;  %v1933_v17 = vadd.f32 %v1926_v9, %v1920_v14  ;;  %v1934_v19 = vadd.f32 %v1927_v61, %v1921_v62 }
 0xc73   : > { %1936 = vst.msk [vmem:[%s442_s26] sm:$0x3] %vm1935_vm15, %v1931_v63 }
 0xc74   : > { %1937 = vst.msk [vmem:[%s442_s26 + $0x2] sm:$0x3] %vm1935_vm15, %v1932_v0 }
 0xc75   : > { %1938 = vst.msk [vmem:[%s442_s26 + $0x4] sm:$0x3] %vm1935_vm15, %v1933_v17 }
 0xc76   : > { %1939 = vst.msk [vmem:[%s442_s26 + $0x6] sm:$0x3] %vm1935_vm15, %v1934_v19 }
 0xc77 PF: > { %s23_s25 = sadd.s32 1, %s2204_s25  }
 0xc78   : > { %p20_p4 = scmp.ge.s32.totalorder %s23_s25, 4  }
 0xc7a   :  { %22 = sbr.rel (!%p20_p4) target bundleno = 1 (0x1), region = 123 }

// kernel: transformer_forward.11
= control target key start
LH: loop header
LB: loop body
LE: loop exit
PB: predicated region body
PF: predicated region fallthrough
CT: control target
= control target key end

     0   :  { %s180_s0 = inlined_call_operand.vmem [shape: f32[2,64], index: 0, kind: input, shape index: {}]   ;;  %s181_s1 = inlined_call_operand.vmem [shape: bf16[64,3], index: 1, kind: input, shape index: {}]   ;;  %s182_s2 = inlined_call_operand.vmem [shape: f32[1,3], index: 2, kind: input, shape index: {}]   ;;  %s183_s3 = inlined_call_operand.hbm [shape: f32[2,3], index: 3, kind: output, shape index: {}]  }
   0x1   :  { %v109_v0 = vld [vmem:[%s181_s1 + $0x18] sm:$0xff]  ;;  %v108_v1 = vld [vmem:[%s181_s1 + $0x10] sm:$0xff] }
   0x2   :  { %62 = vmatpush.bf16.msra.mxu0 %v109_v0 }
   0x3   :  { %8 = vsyncpa [#allocation3], 0  ;;  %v107_v2 = vld [vmem:[%s181_s1 + $0x8] sm:$0xff]  ;;  %v106_v3 = vld [vmem:[%s181_s1] sm:$0xff]  ;;  %vm54_vm0 = vcmask 523264   ;;  %s138_s24 = smov [#allocation2]  }
   0x4   :  { %v16_v4 = vld [vmem:[%s180_s0] sm:$0x3]  ;;  %s78_s25 = sshll.u32 %s138_s24, 4  ;;  %s80_s28 = sshll.u32 %s183_s3, 4  ;;  %vm71_vm1 = vcmask 17408   ;;  %s79_s25 = int_to_ptr.vmem [resolvable:$true] %s78_s25  ;;  %s81_s28 = int_to_ptr.hbm [resolvable:$true] %s80_s28 }
   0x5   :  { %v17_v5 = vpack.c.bf16 %v16_v4, %v16_v4  ;;  %v111_v6 = vld [vmem:[%s182_s2] ss:$0 sm:$0xff] }
   0x6   :  { %63 = vmatpush.bf16.msra.mxu0 %v108_v1 }
   0xa   :  { %64 = vmatpush.bf16.msra.mxu0 %v107_v2 }
   0xe   :  { %65 = vmatpush.bf16.msra.mxu0 %v106_v3 }
  0x11   :  { %105 = vmatmul.msk.bf16.vlgmr.msra.gmra.mxu0 %vm54_vm0, %v17_v5 }
  0x8e   :  { %v67_v7 = vpop.f32.mrf.mxu0 }
  0x8f   :  { %v68_v8 = vadd.f32 %v111_v6, %v67_v7 }
  0x91   :  { %72 = vst.msk [vmem:[#allocation2] sm:$0x3] %vm71_vm1, %v68_v8 }
  0x92   :  { %83 = dma.vmem_to_hbm [thread:$0]  %s79_s25, 32, %s81_s28, [#allocation3]  }
  0x96   :  { %v69_v9 = vpop.f32.mrf.mxu0 }
  0x97   :  { %136 = dma.done.wait [#allocation3], 32  }
  0x98   :  { %137 = vsyncadd [#allocation3], 4294967264 }
  0x99   :  { %88 = vsyncpa [#allocation3], 1 }

</bundles_post_ra>
